<compile_context>
chip_gen: v7x
topology: tpu7x:2x2x1
jax: 0.10.0
libtpu: 0.0.40
codegen_flags: <defaults>
</compile_context>

<pallas_src>
import functools

import jax
import jax.numpy as jnp
from jax.experimental import pallas as pl
from jax.experimental.pallas import tpu as pltpu

LANES = 128  # one vreg lane group; all packed gate groups live inside it


# ----------------------------------------------------------------------------
# In-kernel LSTM cell update on lane-PACKED gates (PyTorch order i, f, g, o)
# ----------------------------------------------------------------------------
def _sigmoid_1eup(x):
    # sigmoid(x) = 0.5 * (1 + tanh(0.5 x)): exactly one EUP op per tile.
    return 0.5 * (jnp.tanh(0.5 * x) + 1.0)


def _gate_update(pre, c, hw, g_mask):
    """pre: (bp, 128) with packed gates [i|f|g|o], each `hw` lanes; c: (bp, hw)."""
    act = jnp.where(g_mask, jnp.tanh(pre), _sigmoid_1eup(pre))   # 2 EUP tiles
    i = act[:, 0 * hw:1 * hw]
    f = act[:, 1 * hw:2 * hw]
    g = act[:, 2 * hw:3 * hw]
    o = act[:, 3 * hw:4 * hw]
    c_new = f * c + i * g
    h_new = o * jnp.tanh(c_new)                                  # 1 EUP tile
    return h_new, c_new


# ----------------------------------------------------------------------------
# Fused encoder + decoder kernel (single invocation, no grid, all in VMEM)
# ----------------------------------------------------------------------------
def fused_lstm_ae_kernel(x_ref, w_enc_ref, b_enc_ref, w_dih_ref, w_dhh_ref,
                         b_dec_ref, out_ref, *, seq_len, bp, enc_h, dec_h):
    # x_ref:     (T, bp, 128)  time-major; features pre-placed in lanes [enc_h, enc_h+F)
    # w_enc_ref: (128, 128)    rows [0,enc_h)=W_hh^T, rows [enc_h,enc_h+F)=W_ih^T,
    #                          cols = packed gates [i|f|g|o], each enc_h wide
    # b_enc_ref: (1, 128)      packed encoder bias (b_ih + b_hh)
    # w_dih_ref: (128, 128)    rows [0,enc_h)=dec W_ih^T, cols packed gates (each dec_h wide)
    # w_dhh_ref: (8, 128)      rows [0,dec_h)=dec W_hh^T, cols packed gates
    # b_dec_ref: (1, 128)      packed decoder bias
    # out_ref:   (T, bp, 128)  decoder hidden states in lanes [0, dec_h)
    lane = jax.lax.broadcasted_iota(jnp.int32, (bp, LANES), 1)

    # ------------------------------ encoder ------------------------------
    w_enc = w_enc_ref[...]            # 64 KiB packed weight: safe to hoist once
    b_enc = b_enc_ref[...]
    g_mask_e = (lane >= 2 * enc_h) & (lane < 3 * enc_h)
    pad_e = jnp.zeros((bp, LANES - enc_h), jnp.float32)

    h = jnp.zeros((bp, enc_h), jnp.float32)
    c = jnp.zeros((bp, enc_h), jnp.float32)
    for t in range(seq_len):                         # fully unrolled (T small)
        # combined LHS: h in lanes [0,enc_h); x_t already sits in [enc_h,enc_h+F)
        lhs = jnp.concatenate([h, pad_e], axis=1) + x_ref[t]
        pre = jnp.dot(lhs, w_enc, preferred_element_type=jnp.float32) + b_enc
        h, c = _gate_update(pre, c, enc_h, g_mask_e)
    h_enc = jnp.concatenate([h, pad_e], axis=1)      # (bp,128), exact zeros beyond enc_h

    # ------------------------------ decoder ------------------------------
    # time-constant input projection: computed ONCE (input = final encoder h)
    dec_in = (jnp.dot(h_enc, w_dih_ref[...], preferred_element_type=jnp.float32)
              + b_dec_ref[...])                      # (bp,128), gates at lanes [0, 4*dec_h)
    w_dhh = w_dhh_ref[...]                           # (8,128), rows [0,dec_h) non-zero
    g_mask_d = (lane >= 2 * dec_h) & (lane < 3 * dec_h)
    pad_d = jnp.zeros((bp, LANES - dec_h), jnp.float32)

    hd = jnp.zeros((bp, dec_h), jnp.float32)
    cd = jnp.zeros((bp, dec_h), jnp.float32)
    for t in range(seq_len):                         # fully unrolled
        # decoder recurrence on the VPU: W_hh is really (dec_h, 4*dec_h) = (4,16),
        # so hd @ W_hh = 4 broadcast multiply-adds (no mostly-zero MXU RHS per step).
        pre = dec_in
        for k in range(dec_h):
            pre = pre + hd[:, k:k + 1] * w_dhh[k:k + 1, :]
        hd, cd = _gate_update(pre, cd, dec_h, g_mask_d)
        out_ref[t] = jnp.concatenate([hd, pad_d], axis=1)   # lane-dense (bp,128) store


# ----------------------------------------------------------------------------
# One-time parameter packing (hoisted out of the per-call path)
# ----------------------------------------------------------------------------
def prepare_params(params, *, n_features, embedding_dim):
    H, F = embedding_dim, n_features
    assert 4 * H <= LANES, "packed encoder gates must fit one 128-lane group"
    assert 4 * F <= LANES and H + F <= LANES
    # TODO(synk): for embedding_dim > 32 the packed gate group exceeds 128 lanes;
    # generalize the packing to multiple lane groups before scaling the model.
    f32 = jnp.float32
    w_enc = jnp.zeros((LANES, LANES), f32)
    w_enc = w_enc.at[:H, :4 * H].set(params["enc_w_hhT"].astype(f32))       # h rows
    w_enc = w_enc.at[H:H + F, :4 * H].set(params["enc_w_ihT"].astype(f32))  # x rows
    b_enc = jnp.zeros((1, LANES), f32).at[:, :4 * H].set(params["enc_b"].astype(f32))
    w_dih = jnp.zeros((LANES, LANES), f32).at[:H, :4 * F].set(params["dec_w_ihT"].astype(f32))
    w_dhh = jnp.zeros((8, LANES), f32).at[:F, :4 * F].set(params["dec_w_hhT"].astype(f32))
    b_dec = jnp.zeros((1, LANES), f32).at[:, :4 * F].set(params["dec_b"].astype(f32))
    return {"w_enc": w_enc, "b_enc": b_enc, "w_dih": w_dih,
            "w_dhh": w_dhh, "b_dec": b_dec}


# ----------------------------------------------------------------------------
# Module forward (batch_first in / batch_first out, like the PyTorch spec)
# ----------------------------------------------------------------------------
def lstm_autoencoder_forward(x_btf, packed, *, seq_len, n_features, embedding_dim):
    B, T, F = x_btf.shape
    assert T == seq_len and F == n_features
    H = embedding_dim
    bp = max(8, ((B + 7) // 8) * 8)                  # pad batch to f32 sublane tile

    # batch-first -> time-major; place features at lanes [H, H+F) so the
    # in-kernel LHS is simply (h ++ zeros) + x_slab[t]
    x_tbf = jnp.transpose(x_btf, (1, 0, 2)).astype(jnp.float32)
    x_slab = jnp.zeros((T, bp, LANES), jnp.float32).at[:, :B, H:H + F].set(x_tbf)

    kernel = functools.partial(fused_lstm_ae_kernel, seq_len=T, bp=bp,
                               enc_h=H, dec_h=F)
    vmem = pl.BlockSpec(memory_space=pltpu.MemorySpace.VMEM)
    out = pl.pallas_call(
        kernel,
        out_shape=jax.ShapeDtypeStruct((T, bp, LANES), jnp.float32),
        in_specs=[vmem] * 6,
        out_specs=vmem,
        # TODO(synk): on v7x with large batches, add a leading batch grid axis with
        # dimension_semantics=("parallel",) so the second TensorCore is used.
    )(x_slab, packed["w_enc"], packed["b_enc"], packed["w_dih"],
      packed["w_dhh"], packed["b_dec"])

    # (T, bp, 128) -> (B, T, n_features)
    return jnp.transpose(out[:, :B, :F], (1, 0, 2))


# ----------------------------------------------------------------------------
# Pure-JAX reference (lax.scan) for correctness checking
# ----------------------------------------------------------------------------
def _ref_lstm_cell(x_t, h, c, w_ihT, w_hhT, b, hidden):
    gates = x_t @ w_ihT + h @ w_hhT + b
    i = jax.nn.sigmoid(gates[:, 0 * hidden:1 * hidden])
    f = jax.nn.sigmoid(gates[:, 1 * hidden:2 * hidden])
    g = jnp.tanh(gates[:, 2 * hidden:3 * hidden])
    o = jax.nn.sigmoid(gates[:, 3 * hidden:4 * hidden])
    c_new = f * c + i * g
    return o * jnp.tanh(c_new), c_new


def _ref_lstm(x_tbf, w_ihT, w_hhT, b, hidden):
    B = x_tbf.shape[1]

    def step(carry, x_t):
        h, c = carry
        h_new, c_new = _ref_lstm_cell(x_t, h, c, w_ihT, w_hhT, b, hidden)
        return (h_new, c_new), h_new

    init = (jnp.zeros((B, hidden), jnp.float32),
            jnp.zeros((B, hidden), jnp.float32))
    (h_last, _), hs = jax.lax.scan(step, init, x_tbf)
    return h_last, hs


def reference_forward(x_btf, params, seq_len, n_features, embedding_dim):
    x_tbf = jnp.transpose(x_btf, (1, 0, 2))
    h_n, _ = _ref_lstm(x_tbf, params["enc_w_ihT"], params["enc_w_hhT"],
                       params["enc_b"], embedding_dim)
    dec_in = jnp.broadcast_to(h_n[None], (seq_len,) + h_n.shape)
    _, hs = _ref_lstm(dec_in, params["dec_w_ihT"], params["dec_w_hhT"],
                      params["dec_b"], n_features)
    return jnp.transpose(hs, (1, 0, 2))


# ----------------------------------------------------------------------------
# Deterministic parameter init (matching PyTorch nn.LSTM parameter shapes)
# ----------------------------------------------------------------------------
def init_params(key, n_features, embedding_dim):
    ks = jax.random.split(key, 8)

    def u(k, shape, bound):
        return jax.random.uniform(k, shape, jnp.float32, -bound, bound)

    H = embedding_dim
    be = 1.0 / jnp.sqrt(jnp.float32(H))
    enc_w_ih = u(ks[0], (4 * H, n_features), be)
    enc_w_hh = u(ks[1], (4 * H, H), be)
    enc_b_ih = u(ks[2], (4 * H,), be)
    enc_b_hh = u(ks[3], (4 * H,), be)

    Hd = n_features
    bd = 1.0 / jnp.sqrt(jnp.float32(Hd))
    dec_w_ih = u(ks[4], (4 * Hd, embedding_dim), bd)
    dec_w_hh = u(ks[5], (4 * Hd, Hd), bd)
    dec_b_ih = u(ks[6], (4 * Hd,), bd)
    dec_b_hh = u(ks[7], (4 * Hd,), bd)

    return {
        "enc_w_ihT": enc_w_ih.T,                              # (F, 4H)   gates packed
        "enc_w_hhT": enc_w_hh.T,                              # (H, 4H)
        "enc_b": (enc_b_ih + enc_b_hh)[None, :],              # (1, 4H)
        "dec_w_ihT": dec_w_ih.T,                              # (H, 4Hd)
        "dec_w_hhT": dec_w_hh.T,                              # (Hd, 4Hd)
        "dec_b": (dec_b_ih + dec_b_hh)[None, :],              # (1, 4Hd)
    }


if __name__ == "__main__":
    batch = 2
    seq_len = 8
    n_features = 4
    embedding_dim = 32

    key = jax.random.PRNGKey(0)
    k_x, k_p = jax.random.split(key)
    x = jax.random.normal(k_x, (batch, seq_len, n_features), jnp.float32)
    params = init_params(k_p, n_features, embedding_dim)

    # one-time weight packing (out of the per-call path)
    packed = prepare_params(params, n_features=n_features, embedding_dim=embedding_dim)

    fwd = jax.jit(functools.partial(lstm_autoencoder_forward,
                                    seq_len=seq_len, n_features=n_features,
                                    embedding_dim=embedding_dim))
    out = jax.block_until_ready(fwd(x, packed))

    ref = reference_forward(x, params, seq_len, n_features, embedding_dim)
    assert out.shape == (batch, seq_len, n_features), out.shape
    max_err = float(jnp.max(jnp.abs(out - ref)))
    # tanh-form sigmoid + fused matmul accumulation order differ from the XLA
    # reference at the ~1e-6 level; 1e-4 still catches any real bug.
    assert max_err < 1e-4, max_err
    print("KERNEL_OK")
</pallas_src>

<mosaic_0001>
module attributes {stable_mosaic.version = 11 : i64} {
  func.func @fused_lstm_ae_kernel(%arg0: memref<8x8x128xf32, #tpu.memory_space<vmem>>, %arg1: memref<128x128xf32, #tpu.memory_space<vmem>>, %arg2: memref<1x128xf32, #tpu.memory_space<vmem>>, %arg3: memref<128x128xf32, #tpu.memory_space<vmem>>, %arg4: memref<8x128xf32, #tpu.memory_space<vmem>>, %arg5: memref<1x128xf32, #tpu.memory_space<vmem>>, %arg6: memref<8x8x128xf32, #tpu.memory_space<vmem>>) attributes {dimension_semantics = [], scalar_prefetch = 0 : i64, scratch_operands = 0 : i64, tpu.core_type = #tpu.core_type<tc>} {
    %0 = tpu.iota {dimensions = array<i32: 1>} : vector<8x128xi32>
    %c0 = arith.constant 0 : index
    %c0_0 = arith.constant 0 : index
    %1 = vector.load %arg1[%c0, %c0_0] : memref<128x128xf32, #tpu.memory_space<vmem>>, vector<128x128xf32>
    %c0_1 = arith.constant 0 : index
    %c0_2 = arith.constant 0 : index
    %2 = vector.load %arg2[%c0_1, %c0_2] : memref<1x128xf32, #tpu.memory_space<vmem>>, vector<1x128xf32>
    %c64_i32 = arith.constant 64 : i32
    %3 = vector.broadcast %c64_i32 : i32 to vector<8x128xi32>
    %4 = arith.cmpi sge, %0, %3 : vector<8x128xi32>
    %c96_i32 = arith.constant 96 : i32
    %5 = vector.broadcast %c96_i32 : i32 to vector<8x128xi32>
    %6 = arith.cmpi slt, %0, %5 : vector<8x128xi32>
    %7 = arith.andi %4, %6 : vector<8x128xi1>
    %cst = arith.constant 0.000000e+00 : f32
    %8 = vector.broadcast %cst : f32 to vector<8x96xf32>
    %cst_3 = arith.constant 0.000000e+00 : f32
    %9 = vector.broadcast %cst_3 : f32 to vector<8x32xf32>
    %cst_4 = arith.constant 0.000000e+00 : f32
    %10 = vector.broadcast %cst_4 : f32 to vector<8x32xf32>
    %11 = tpu.concatenate %9, %8 in 1 : vector<8x32xf32>, vector<8x96xf32> -> vector<8x128xf32>
    %c0_5 = arith.constant 0 : index
    %c0_6 = arith.constant 0 : index
    %c0_7 = arith.constant 0 : index
    %12 = vector.load %arg0[%c0_5, %c0_6, %c0_7] : memref<8x8x128xf32, #tpu.memory_space<vmem>>, vector<1x8x128xf32>
    %13 = vector.shape_cast %12 : vector<1x8x128xf32> to vector<8x128xf32>
    %14 = arith.addf %11, %13 : vector<8x128xf32>
    %cst_8 = arith.constant dense<0.000000e+00> : vector<8x128xf32>
    %15 = tpu.matmul %14, %1, %cst_8 {dimension_numbers = #tpu.dot_dimension_numbers<[1], [0], [0], [1], [0, 0, 1, 1], [], []>} : vector<8x128xf32>, vector<128x128xf32>, vector<8x128xf32> -> vector<8x128xf32>
    %16 = vector.broadcast %2 : vector<1x128xf32> to vector<8x128xf32>
    %17 = arith.addf %15, %16 : vector<8x128xf32>
    %18 = math.tanh %17 : vector<8x128xf32>
    %cst_9 = arith.constant 5.000000e-01 : f32
    %19 = vector.broadcast %cst_9 : f32 to vector<8x128xf32>
    %20 = arith.mulf %19, %17 : vector<8x128xf32>
    %21 = math.tanh %20 : vector<8x128xf32>
    %cst_10 = arith.constant 1.000000e+00 : f32
    %22 = vector.broadcast %cst_10 : f32 to vector<8x128xf32>
    %23 = arith.addf %21, %22 : vector<8x128xf32>
    %cst_11 = arith.constant 5.000000e-01 : f32
    %24 = vector.broadcast %cst_11 : f32 to vector<8x128xf32>
    %25 = arith.mulf %24, %23 : vector<8x128xf32>
    %26 = arith.select %7, %18, %25 : vector<8x128xi1>, vector<8x128xf32>
    %27 = vector.extract_strided_slice %26 {offsets = [0, 0], sizes = [8, 32], strides = [1, 1]} : vector<8x128xf32> to vector<8x32xf32>
    %28 = vector.extract_strided_slice %26 {offsets = [0, 32], sizes = [8, 32], strides = [1, 1]} : vector<8x128xf32> to vector<8x32xf32>
    %29 = vector.extract_strided_slice %26 {offsets = [0, 64], sizes = [8, 32], strides = [1, 1]} : vector<8x128xf32> to vector<8x32xf32>
    %30 = vector.extract_strided_slice %26 {offsets = [0, 96], sizes = [8, 32], strides = [1, 1]} : vector<8x128xf32> to vector<8x32xf32>
    %31 = arith.mulf %28, %10 : vector<8x32xf32>
    %32 = arith.mulf %27, %29 : vector<8x32xf32>
    %33 = arith.addf %31, %32 : vector<8x32xf32>
    %34 = math.tanh %33 : vector<8x32xf32>
    %35 = arith.mulf %30, %34 : vector<8x32xf32>
    %36 = tpu.concatenate %35, %8 in 1 : vector<8x32xf32>, vector<8x96xf32> -> vector<8x128xf32>
    %c1 = arith.constant 1 : index
    %c0_12 = arith.constant 0 : index
    %c0_13 = arith.constant 0 : index
    %37 = vector.load %arg0[%c1, %c0_12, %c0_13] : memref<8x8x128xf32, #tpu.memory_space<vmem>>, vector<1x8x128xf32>
    %38 = vector.shape_cast %37 : vector<1x8x128xf32> to vector<8x128xf32>
    %39 = arith.addf %36, %38 : vector<8x128xf32>
    %cst_14 = arith.constant dense<0.000000e+00> : vector<8x128xf32>
    %40 = tpu.matmul %39, %1, %cst_14 {dimension_numbers = #tpu.dot_dimension_numbers<[1], [0], [0], [1], [0, 0, 1, 1], [], []>} : vector<8x128xf32>, vector<128x128xf32>, vector<8x128xf32> -> vector<8x128xf32>
    %41 = vector.broadcast %2 : vector<1x128xf32> to vector<8x128xf32>
    %42 = arith.addf %40, %41 : vector<8x128xf32>
    %43 = math.tanh %42 : vector<8x128xf32>
    %cst_15 = arith.constant 5.000000e-01 : f32
    %44 = vector.broadcast %cst_15 : f32 to vector<8x128xf32>
    %45 = arith.mulf %44, %42 : vector<8x128xf32>
    %46 = math.tanh %45 : vector<8x128xf32>
    %cst_16 = arith.constant 1.000000e+00 : f32
    %47 = vector.broadcast %cst_16 : f32 to vector<8x128xf32>
    %48 = arith.addf %46, %47 : vector<8x128xf32>
    %cst_17 = arith.constant 5.000000e-01 : f32
    %49 = vector.broadcast %cst_17 : f32 to vector<8x128xf32>
    %50 = arith.mulf %49, %48 : vector<8x128xf32>
    %51 = arith.select %7, %43, %50 : vector<8x128xi1>, vector<8x128xf32>
    %52 = vector.extract_strided_slice %51 {offsets = [0, 0], sizes = [8, 32], strides = [1, 1]} : vector<8x128xf32> to vector<8x32xf32>
    %53 = vector.extract_strided_slice %51 {offsets = [0, 32], sizes = [8, 32], strides = [1, 1]} : vector<8x128xf32> to vector<8x32xf32>
    %54 = vector.extract_strided_slice %51 {offsets = [0, 64], sizes = [8, 32], strides = [1, 1]} : vector<8x128xf32> to vector<8x32xf32>
    %55 = vector.extract_strided_slice %51 {offsets = [0, 96], sizes = [8, 32], strides = [1, 1]} : vector<8x128xf32> to vector<8x32xf32>
    %56 = arith.mulf %53, %33 : vector<8x32xf32>
    %57 = arith.mulf %52, %54 : vector<8x32xf32>
    %58 = arith.addf %56, %57 : vector<8x32xf32>
    %59 = math.tanh %58 : vector<8x32xf32>
    %60 = arith.mulf %55, %59 : vector<8x32xf32>
    %61 = tpu.concatenate %60, %8 in 1 : vector<8x32xf32>, vector<8x96xf32> -> vector<8x128xf32>
    %c2 = arith.constant 2 : index
    %c0_18 = arith.constant 0 : index
    %c0_19 = arith.constant 0 : index
    %62 = vector.load %arg0[%c2, %c0_18, %c0_19] : memref<8x8x128xf32, #tpu.memory_space<vmem>>, vector<1x8x128xf32>
    %63 = vector.shape_cast %62 : vector<1x8x128xf32> to vector<8x128xf32>
    %64 = arith.addf %61, %63 : vector<8x128xf32>
    %cst_20 = arith.constant dense<0.000000e+00> : vector<8x128xf32>
    %65 = tpu.matmul %64, %1, %cst_20 {dimension_numbers = #tpu.dot_dimension_numbers<[1], [0], [0], [1], [0, 0, 1, 1], [], []>} : vector<8x128xf32>, vector<128x128xf32>, vector<8x128xf32> -> vector<8x128xf32>
    %66 = vector.broadcast %2 : vector<1x128xf32> to vector<8x128xf32>
    %67 = arith.addf %65, %66 : vector<8x128xf32>
    %68 = math.tanh %67 : vector<8x128xf32>
    %cst_21 = arith.constant 5.000000e-01 : f32
    %69 = vector.broadcast %cst_21 : f32 to vector<8x128xf32>
    %70 = arith.mulf %69, %67 : vector<8x128xf32>
    %71 = math.tanh %70 : vector<8x128xf32>
    %cst_22 = arith.constant 1.000000e+00 : f32
    %72 = vector.broadcast %cst_22 : f32 to vector<8x128xf32>
    %73 = arith.addf %71, %72 : vector<8x128xf32>
    %cst_23 = arith.constant 5.000000e-01 : f32
    %74 = vector.broadcast %cst_23 : f32 to vector<8x128xf32>
    %75 = arith.mulf %74, %73 : vector<8x128xf32>
    %76 = arith.select %7, %68, %75 : vector<8x128xi1>, vector<8x128xf32>
    %77 = vector.extract_strided_slice %76 {offsets = [0, 0], sizes = [8, 32], strides = [1, 1]} : vector<8x128xf32> to vector<8x32xf32>
    %78 = vector.extract_strided_slice %76 {offsets = [0, 32], sizes = [8, 32], strides = [1, 1]} : vector<8x128xf32> to vector<8x32xf32>
    %79 = vector.extract_strided_slice %76 {offsets = [0, 64], sizes = [8, 32], strides = [1, 1]} : vector<8x128xf32> to vector<8x32xf32>
    %80 = vector.extract_strided_slice %76 {offsets = [0, 96], sizes = [8, 32], strides = [1, 1]} : vector<8x128xf32> to vector<8x32xf32>
    %81 = arith.mulf %78, %58 : vector<8x32xf32>
    %82 = arith.mulf %77, %79 : vector<8x32xf32>
    %83 = arith.addf %81, %82 : vector<8x32xf32>
    %84 = math.tanh %83 : vector<8x32xf32>
    %85 = arith.mulf %80, %84 : vector<8x32xf32>
    %86 = tpu.concatenate %85, %8 in 1 : vector<8x32xf32>, vector<8x96xf32> -> vector<8x128xf32>
    %c3 = arith.constant 3 : index
    %c0_24 = arith.constant 0 : index
    %c0_25 = arith.constant 0 : index
    %87 = vector.load %arg0[%c3, %c0_24, %c0_25] : memref<8x8x128xf32, #tpu.memory_space<vmem>>, vector<1x8x128xf32>
    %88 = vector.shape_cast %87 : vector<1x8x128xf32> to vector<8x128xf32>
    %89 = arith.addf %86, %88 : vector<8x128xf32>
    %cst_26 = arith.constant dense<0.000000e+00> : vector<8x128xf32>
    %90 = tpu.matmul %89, %1, %cst_26 {dimension_numbers = #tpu.dot_dimension_numbers<[1], [0], [0], [1], [0, 0, 1, 1], [], []>} : vector<8x128xf32>, vector<128x128xf32>, vector<8x128xf32> -> vector<8x128xf32>
    %91 = vector.broadcast %2 : vector<1x128xf32> to vector<8x128xf32>
    %92 = arith.addf %90, %91 : vector<8x128xf32>
    %93 = math.tanh %92 : vector<8x128xf32>
    %cst_27 = arith.constant 5.000000e-01 : f32
    %94 = vector.broadcast %cst_27 : f32 to vector<8x128xf32>
    %95 = arith.mulf %94, %92 : vector<8x128xf32>
    %96 = math.tanh %95 : vector<8x128xf32>
    %cst_28 = arith.constant 1.000000e+00 : f32
    %97 = vector.broadcast %cst_28 : f32 to vector<8x128xf32>
    %98 = arith.addf %96, %97 : vector<8x128xf32>
    %cst_29 = arith.constant 5.000000e-01 : f32
    %99 = vector.broadcast %cst_29 : f32 to vector<8x128xf32>
    %100 = arith.mulf %99, %98 : vector<8x128xf32>
    %101 = arith.select %7, %93, %100 : vector<8x128xi1>, vector<8x128xf32>
    %102 = vector.extract_strided_slice %101 {offsets = [0, 0], sizes = [8, 32], strides = [1, 1]} : vector<8x128xf32> to vector<8x32xf32>
    %103 = vector.extract_strided_slice %101 {offsets = [0, 32], sizes = [8, 32], strides = [1, 1]} : vector<8x128xf32> to vector<8x32xf32>
    %104 = vector.extract_strided_slice %101 {offsets = [0, 64], sizes = [8, 32], strides = [1, 1]} : vector<8x128xf32> to vector<8x32xf32>
    %105 = vector.extract_strided_slice %101 {offsets = [0, 96], sizes = [8, 32], strides = [1, 1]} : vector<8x128xf32> to vector<8x32xf32>
    %106 = arith.mulf %103, %83 : vector<8x32xf32>
    %107 = arith.mulf %102, %104 : vector<8x32xf32>
    %108 = arith.addf %106, %107 : vector<8x32xf32>
    %109 = math.tanh %108 : vector<8x32xf32>
    %110 = arith.mulf %105, %109 : vector<8x32xf32>
    %111 = tpu.concatenate %110, %8 in 1 : vector<8x32xf32>, vector<8x96xf32> -> vector<8x128xf32>
    %c4 = arith.constant 4 : index
    %c0_30 = arith.constant 0 : index
    %c0_31 = arith.constant 0 : index
    %112 = vector.load %arg0[%c4, %c0_30, %c0_31] : memref<8x8x128xf32, #tpu.memory_space<vmem>>, vector<1x8x128xf32>
    %113 = vector.shape_cast %112 : vector<1x8x128xf32> to vector<8x128xf32>
    %114 = arith.addf %111, %113 : vector<8x128xf32>
    %cst_32 = arith.constant dense<0.000000e+00> : vector<8x128xf32>
    %115 = tpu.matmul %114, %1, %cst_32 {dimension_numbers = #tpu.dot_dimension_numbers<[1], [0], [0], [1], [0, 0, 1, 1], [], []>} : vector<8x128xf32>, vector<128x128xf32>, vector<8x128xf32> -> vector<8x128xf32>
    %116 = vector.broadcast %2 : vector<1x128xf32> to vector<8x128xf32>
    %117 = arith.addf %115, %116 : vector<8x128xf32>
    %118 = math.tanh %117 : vector<8x128xf32>
    %cst_33 = arith.constant 5.000000e-01 : f32
    %119 = vector.broadcast %cst_33 : f32 to vector<8x128xf32>
    %120 = arith.mulf %119, %117 : vector<8x128xf32>
    %121 = math.tanh %120 : vector<8x128xf32>
    %cst_34 = arith.constant 1.000000e+00 : f32
    %122 = vector.broadcast %cst_34 : f32 to vector<8x128xf32>
    %123 = arith.addf %121, %122 : vector<8x128xf32>
    %cst_35 = arith.constant 5.000000e-01 : f32
    %124 = vector.broadcast %cst_35 : f32 to vector<8x128xf32>
    %125 = arith.mulf %124, %123 : vector<8x128xf32>
    %126 = arith.select %7, %118, %125 : vector<8x128xi1>, vector<8x128xf32>
    %127 = vector.extract_strided_slice %126 {offsets = [0, 0], sizes = [8, 32], strides = [1, 1]} : vector<8x128xf32> to vector<8x32xf32>
    %128 = vector.extract_strided_slice %126 {offsets = [0, 32], sizes = [8, 32], strides = [1, 1]} : vector<8x128xf32> to vector<8x32xf32>
    %129 = vector.extract_strided_slice %126 {offsets = [0, 64], sizes = [8, 32], strides = [1, 1]} : vector<8x128xf32> to vector<8x32xf32>
    %130 = vector.extract_strided_slice %126 {offsets = [0, 96], sizes = [8, 32], strides = [1, 1]} : vector<8x128xf32> to vector<8x32xf32>
    %131 = arith.mulf %128, %108 : vector<8x32xf32>
    %132 = arith.mulf %127, %129 : vector<8x32xf32>
    %133 = arith.addf %131, %132 : vector<8x32xf32>
    %134 = math.tanh %133 : vector<8x32xf32>
    %135 = arith.mulf %130, %134 : vector<8x32xf32>
    %136 = tpu.concatenate %135, %8 in 1 : vector<8x32xf32>, vector<8x96xf32> -> vector<8x128xf32>
    %c5 = arith.constant 5 : index
    %c0_36 = arith.constant 0 : index
    %c0_37 = arith.constant 0 : index
    %137 = vector.load %arg0[%c5, %c0_36, %c0_37] : memref<8x8x128xf32, #tpu.memory_space<vmem>>, vector<1x8x128xf32>
    %138 = vector.shape_cast %137 : vector<1x8x128xf32> to vector<8x128xf32>
    %139 = arith.addf %136, %138 : vector<8x128xf32>
    %cst_38 = arith.constant dense<0.000000e+00> : vector<8x128xf32>
    %140 = tpu.matmul %139, %1, %cst_38 {dimension_numbers = #tpu.dot_dimension_numbers<[1], [0], [0], [1], [0, 0, 1, 1], [], []>} : vector<8x128xf32>, vector<128x128xf32>, vector<8x128xf32> -> vector<8x128xf32>
    %141 = vector.broadcast %2 : vector<1x128xf32> to vector<8x128xf32>
    %142 = arith.addf %140, %141 : vector<8x128xf32>
    %143 = math.tanh %142 : vector<8x128xf32>
    %cst_39 = arith.constant 5.000000e-01 : f32
    %144 = vector.broadcast %cst_39 : f32 to vector<8x128xf32>
    %145 = arith.mulf %144, %142 : vector<8x128xf32>
    %146 = math.tanh %145 : vector<8x128xf32>
    %cst_40 = arith.constant 1.000000e+00 : f32
    %147 = vector.broadcast %cst_40 : f32 to vector<8x128xf32>
    %148 = arith.addf %146, %147 : vector<8x128xf32>
    %cst_41 = arith.constant 5.000000e-01 : f32
    %149 = vector.broadcast %cst_41 : f32 to vector<8x128xf32>
    %150 = arith.mulf %149, %148 : vector<8x128xf32>
    %151 = arith.select %7, %143, %150 : vector<8x128xi1>, vector<8x128xf32>
    %152 = vector.extract_strided_slice %151 {offsets = [0, 0], sizes = [8, 32], strides = [1, 1]} : vector<8x128xf32> to vector<8x32xf32>
    %153 = vector.extract_strided_slice %151 {offsets = [0, 32], sizes = [8, 32], strides = [1, 1]} : vector<8x128xf32> to vector<8x32xf32>
    %154 = vector.extract_strided_slice %151 {offsets = [0, 64], sizes = [8, 32], strides = [1, 1]} : vector<8x128xf32> to vector<8x32xf32>
    %155 = vector.extract_strided_slice %151 {offsets = [0, 96], sizes = [8, 32], strides = [1, 1]} : vector<8x128xf32> to vector<8x32xf32>
    %156 = arith.mulf %153, %133 : vector<8x32xf32>
    %157 = arith.mulf %152, %154 : vector<8x32xf32>
    %158 = arith.addf %156, %157 : vector<8x32xf32>
    %159 = math.tanh %158 : vector<8x32xf32>
    %160 = arith.mulf %155, %159 : vector<8x32xf32>
    %161 = tpu.concatenate %160, %8 in 1 : vector<8x32xf32>, vector<8x96xf32> -> vector<8x128xf32>
    %c6 = arith.constant 6 : index
    %c0_42 = arith.constant 0 : index
    %c0_43 = arith.constant 0 : index
    %162 = vector.load %arg0[%c6, %c0_42, %c0_43] : memref<8x8x128xf32, #tpu.memory_space<vmem>>, vector<1x8x128xf32>
    %163 = vector.shape_cast %162 : vector<1x8x128xf32> to vector<8x128xf32>
    %164 = arith.addf %161, %163 : vector<8x128xf32>
    %cst_44 = arith.constant dense<0.000000e+00> : vector<8x128xf32>
    %165 = tpu.matmul %164, %1, %cst_44 {dimension_numbers = #tpu.dot_dimension_numbers<[1], [0], [0], [1], [0, 0, 1, 1], [], []>} : vector<8x128xf32>, vector<128x128xf32>, vector<8x128xf32> -> vector<8x128xf32>
    %166 = vector.broadcast %2 : vector<1x128xf32> to vector<8x128xf32>
    %167 = arith.addf %165, %166 : vector<8x128xf32>
    %168 = math.tanh %167 : vector<8x128xf32>
    %cst_45 = arith.constant 5.000000e-01 : f32
    %169 = vector.broadcast %cst_45 : f32 to vector<8x128xf32>
    %170 = arith.mulf %169, %167 : vector<8x128xf32>
    %171 = math.tanh %170 : vector<8x128xf32>
    %cst_46 = arith.constant 1.000000e+00 : f32
    %172 = vector.broadcast %cst_46 : f32 to vector<8x128xf32>
    %173 = arith.addf %171, %172 : vector<8x128xf32>
    %cst_47 = arith.constant 5.000000e-01 : f32
    %174 = vector.broadcast %cst_47 : f32 to vector<8x128xf32>
    %175 = arith.mulf %174, %173 : vector<8x128xf32>
    %176 = arith.select %7, %168, %175 : vector<8x128xi1>, vector<8x128xf32>
    %177 = vector.extract_strided_slice %176 {offsets = [0, 0], sizes = [8, 32], strides = [1, 1]} : vector<8x128xf32> to vector<8x32xf32>
    %178 = vector.extract_strided_slice %176 {offsets = [0, 32], sizes = [8, 32], strides = [1, 1]} : vector<8x128xf32> to vector<8x32xf32>
    %179 = vector.extract_strided_slice %176 {offsets = [0, 64], sizes = [8, 32], strides = [1, 1]} : vector<8x128xf32> to vector<8x32xf32>
    %180 = vector.extract_strided_slice %176 {offsets = [0, 96], sizes = [8, 32], strides = [1, 1]} : vector<8x128xf32> to vector<8x32xf32>
    %181 = arith.mulf %178, %158 : vector<8x32xf32>
    %182 = arith.mulf %177, %179 : vector<8x32xf32>
    %183 = arith.addf %181, %182 : vector<8x32xf32>
    %184 = math.tanh %183 : vector<8x32xf32>
    %185 = arith.mulf %180, %184 : vector<8x32xf32>
    %186 = tpu.concatenate %185, %8 in 1 : vector<8x32xf32>, vector<8x96xf32> -> vector<8x128xf32>
    %c7 = arith.constant 7 : index
    %c0_48 = arith.constant 0 : index
    %c0_49 = arith.constant 0 : index
    %187 = vector.load %arg0[%c7, %c0_48, %c0_49] : memref<8x8x128xf32, #tpu.memory_space<vmem>>, vector<1x8x128xf32>
    %188 = vector.shape_cast %187 : vector<1x8x128xf32> to vector<8x128xf32>
    %189 = arith.addf %186, %188 : vector<8x128xf32>
    %cst_50 = arith.constant dense<0.000000e+00> : vector<8x128xf32>
    %190 = tpu.matmul %189, %1, %cst_50 {dimension_numbers = #tpu.dot_dimension_numbers<[1], [0], [0], [1], [0, 0, 1, 1], [], []>} : vector<8x128xf32>, vector<128x128xf32>, vector<8x128xf32> -> vector<8x128xf32>
    %191 = vector.broadcast %2 : vector<1x128xf32> to vector<8x128xf32>
    %192 = arith.addf %190, %191 : vector<8x128xf32>
    %193 = math.tanh %192 : vector<8x128xf32>
    %cst_51 = arith.constant 5.000000e-01 : f32
    %194 = vector.broadcast %cst_51 : f32 to vector<8x128xf32>
    %195 = arith.mulf %194, %192 : vector<8x128xf32>
    %196 = math.tanh %195 : vector<8x128xf32>
    %cst_52 = arith.constant 1.000000e+00 : f32
    %197 = vector.broadcast %cst_52 : f32 to vector<8x128xf32>
    %198 = arith.addf %196, %197 : vector<8x128xf32>
    %cst_53 = arith.constant 5.000000e-01 : f32
    %199 = vector.broadcast %cst_53 : f32 to vector<8x128xf32>
    %200 = arith.mulf %199, %198 : vector<8x128xf32>
    %201 = arith.select %7, %193, %200 : vector<8x128xi1>, vector<8x128xf32>
    %202 = vector.extract_strided_slice %201 {offsets = [0, 0], sizes = [8, 32], strides = [1, 1]} : vector<8x128xf32> to vector<8x32xf32>
    %203 = vector.extract_strided_slice %201 {offsets = [0, 32], sizes = [8, 32], strides = [1, 1]} : vector<8x128xf32> to vector<8x32xf32>
    %204 = vector.extract_strided_slice %201 {offsets = [0, 64], sizes = [8, 32], strides = [1, 1]} : vector<8x128xf32> to vector<8x32xf32>
    %205 = vector.extract_strided_slice %201 {offsets = [0, 96], sizes = [8, 32], strides = [1, 1]} : vector<8x128xf32> to vector<8x32xf32>
    %206 = arith.mulf %203, %183 : vector<8x32xf32>
    %207 = arith.mulf %202, %204 : vector<8x32xf32>
    %208 = arith.addf %206, %207 : vector<8x32xf32>
    %209 = math.tanh %208 : vector<8x32xf32>
    %210 = arith.mulf %205, %209 : vector<8x32xf32>
    %211 = tpu.concatenate %210, %8 in 1 : vector<8x32xf32>, vector<8x96xf32> -> vector<8x128xf32>
    %c0_54 = arith.constant 0 : index
    %c0_55 = arith.constant 0 : index
    %212 = vector.load %arg3[%c0_54, %c0_55] : memref<128x128xf32, #tpu.memory_space<vmem>>, vector<128x128xf32>
    %cst_56 = arith.constant dense<0.000000e+00> : vector<8x128xf32>
    %213 = tpu.matmul %211, %212, %cst_56 {dimension_numbers = #tpu.dot_dimension_numbers<[1], [0], [0], [1], [0, 0, 1, 1], [], []>} : vector<8x128xf32>, vector<128x128xf32>, vector<8x128xf32> -> vector<8x128xf32>
    %c0_57 = arith.constant 0 : index
    %c0_58 = arith.constant 0 : index
    %214 = vector.load %arg5[%c0_57, %c0_58] : memref<1x128xf32, #tpu.memory_space<vmem>>, vector<1x128xf32>
    %215 = vector.broadcast %214 : vector<1x128xf32> to vector<8x128xf32>
    %216 = arith.addf %213, %215 : vector<8x128xf32>
    %c0_59 = arith.constant 0 : index
    %c0_60 = arith.constant 0 : index
    %217 = vector.load %arg4[%c0_59, %c0_60] : memref<8x128xf32, #tpu.memory_space<vmem>>, vector<8x128xf32>
    %c8_i32 = arith.constant 8 : i32
    %218 = vector.broadcast %c8_i32 : i32 to vector<8x128xi32>
    %219 = arith.cmpi sge, %0, %218 : vector<8x128xi32>
    %c12_i32 = arith.constant 12 : i32
    %220 = vector.broadcast %c12_i32 : i32 to vector<8x128xi32>
    %221 = arith.cmpi slt, %0, %220 : vector<8x128xi32>
    %222 = arith.andi %219, %221 : vector<8x128xi1>
    %cst_61 = arith.constant 0.000000e+00 : f32
    %223 = vector.broadcast %cst_61 : f32 to vector<8x124xf32>
    %cst_62 = arith.constant 0.000000e+00 : f32
    %224 = vector.broadcast %cst_62 : f32 to vector<8x4xf32>
    %cst_63 = arith.constant 0.000000e+00 : f32
    %225 = vector.broadcast %cst_63 : f32 to vector<8x4xf32>
    %226 = vector.extract_strided_slice %224 {offsets = [0, 0], sizes = [8, 1], strides = [1, 1]} : vector<8x4xf32> to vector<8x1xf32>
    %227 = vector.extract_strided_slice %217 {offsets = [0, 0], sizes = [1, 128], strides = [1, 1]} : vector<8x128xf32> to vector<1x128xf32>
    %228 = vector.broadcast %226 : vector<8x1xf32> to vector<8x128xf32>
    %229 = vector.broadcast %227 : vector<1x128xf32> to vector<8x128xf32>
    %230 = arith.mulf %228, %229 : vector<8x128xf32>
    %231 = arith.addf %216, %230 : vector<8x128xf32>
    %232 = vector.extract_strided_slice %224 {offsets = [0, 1], sizes = [8, 1], strides = [1, 1]} : vector<8x4xf32> to vector<8x1xf32>
    %233 = vector.extract_strided_slice %217 {offsets = [1, 0], sizes = [1, 128], strides = [1, 1]} : vector<8x128xf32> to vector<1x128xf32>
    %234 = vector.broadcast %232 : vector<8x1xf32> to vector<8x128xf32>
    %235 = vector.broadcast %233 : vector<1x128xf32> to vector<8x128xf32>
    %236 = arith.mulf %234, %235 : vector<8x128xf32>
    %237 = arith.addf %231, %236 : vector<8x128xf32>
    %238 = vector.extract_strided_slice %224 {offsets = [0, 2], sizes = [8, 1], strides = [1, 1]} : vector<8x4xf32> to vector<8x1xf32>
    %239 = vector.extract_strided_slice %217 {offsets = [2, 0], sizes = [1, 128], strides = [1, 1]} : vector<8x128xf32> to vector<1x128xf32>
    %240 = vector.broadcast %238 : vector<8x1xf32> to vector<8x128xf32>
    %241 = vector.broadcast %239 : vector<1x128xf32> to vector<8x128xf32>
    %242 = arith.mulf %240, %241 : vector<8x128xf32>
    %243 = arith.addf %237, %242 : vector<8x128xf32>
    %244 = vector.extract_strided_slice %224 {offsets = [0, 3], sizes = [8, 1], strides = [1, 1]} : vector<8x4xf32> to vector<8x1xf32>
    %245 = vector.extract_strided_slice %217 {offsets = [3, 0], sizes = [1, 128], strides = [1, 1]} : vector<8x128xf32> to vector<1x128xf32>
    %246 = vector.broadcast %244 : vector<8x1xf32> to vector<8x128xf32>
    %247 = vector.broadcast %245 : vector<1x128xf32> to vector<8x128xf32>
    %248 = arith.mulf %246, %247 : vector<8x128xf32>
    %249 = arith.addf %243, %248 : vector<8x128xf32>
    %250 = math.tanh %249 : vector<8x128xf32>
    %cst_64 = arith.constant 5.000000e-01 : f32
    %251 = vector.broadcast %cst_64 : f32 to vector<8x128xf32>
    %252 = arith.mulf %251, %249 : vector<8x128xf32>
    %253 = math.tanh %252 : vector<8x128xf32>
    %cst_65 = arith.constant 1.000000e+00 : f32
    %254 = vector.broadcast %cst_65 : f32 to vector<8x128xf32>
    %255 = arith.addf %253, %254 : vector<8x128xf32>
    %cst_66 = arith.constant 5.000000e-01 : f32
    %256 = vector.broadcast %cst_66 : f32 to vector<8x128xf32>
    %257 = arith.mulf %256, %255 : vector<8x128xf32>
    %258 = arith.select %222, %250, %257 : vector<8x128xi1>, vector<8x128xf32>
    %259 = vector.extract_strided_slice %258 {offsets = [0, 0], sizes = [8, 4], strides = [1, 1]} : vector<8x128xf32> to vector<8x4xf32>
    %260 = vector.extract_strided_slice %258 {offsets = [0, 4], sizes = [8, 4], strides = [1, 1]} : vector<8x128xf32> to vector<8x4xf32>
    %261 = vector.extract_strided_slice %258 {offsets = [0, 8], sizes = [8, 4], strides = [1, 1]} : vector<8x128xf32> to vector<8x4xf32>
    %262 = vector.extract_strided_slice %258 {offsets = [0, 12], sizes = [8, 4], strides = [1, 1]} : vector<8x128xf32> to vector<8x4xf32>
    %263 = arith.mulf %260, %225 : vector<8x4xf32>
    %264 = arith.mulf %259, %261 : vector<8x4xf32>
    %265 = arith.addf %263, %264 : vector<8x4xf32>
    %266 = math.tanh %265 : vector<8x4xf32>
    %267 = arith.mulf %262, %266 : vector<8x4xf32>
    %268 = tpu.concatenate %267, %223 in 1 : vector<8x4xf32>, vector<8x124xf32> -> vector<8x128xf32>
    %c0_67 = arith.constant 0 : index
    %c0_68 = arith.constant 0 : index
    %c0_69 = arith.constant 0 : index
    %269 = vector.load %arg6[%c0_67, %c0_68, %c0_69] : memref<8x8x128xf32, #tpu.memory_space<vmem>>, vector<1x8x128xf32>
    %270 = vector.shape_cast %269 : vector<1x8x128xf32> to vector<8x128xf32>
    %271 = vector.shape_cast %268 : vector<8x128xf32> to vector<1x8x128xf32>
    tpu.vector_store %arg6[%c0_67, %c0_68, %c0_69], %271 {strides = array<i32>} : memref<8x8x128xf32, #tpu.memory_space<vmem>>, vector<1x8x128xf32>,
    %272 = vector.extract_strided_slice %267 {offsets = [0, 0], sizes = [8, 1], strides = [1, 1]} : vector<8x4xf32> to vector<8x1xf32>
    %273 = vector.extract_strided_slice %217 {offsets = [0, 0], sizes = [1, 128], strides = [1, 1]} : vector<8x128xf32> to vector<1x128xf32>
    %274 = vector.broadcast %272 : vector<8x1xf32> to vector<8x128xf32>
    %275 = vector.broadcast %273 : vector<1x128xf32> to vector<8x128xf32>
    %276 = arith.mulf %274, %275 : vector<8x128xf32>
    %277 = arith.addf %216, %276 : vector<8x128xf32>
    %278 = vector.extract_strided_slice %267 {offsets = [0, 1], sizes = [8, 1], strides = [1, 1]} : vector<8x4xf32> to vector<8x1xf32>
    %279 = vector.extract_strided_slice %217 {offsets = [1, 0], sizes = [1, 128], strides = [1, 1]} : vector<8x128xf32> to vector<1x128xf32>
    %280 = vector.broadcast %278 : vector<8x1xf32> to vector<8x128xf32>
    %281 = vector.broadcast %279 : vector<1x128xf32> to vector<8x128xf32>
    %282 = arith.mulf %280, %281 : vector<8x128xf32>
    %283 = arith.addf %277, %282 : vector<8x128xf32>
    %284 = vector.extract_strided_slice %267 {offsets = [0, 2], sizes = [8, 1], strides = [1, 1]} : vector<8x4xf32> to vector<8x1xf32>
    %285 = vector.extract_strided_slice %217 {offsets = [2, 0], sizes = [1, 128], strides = [1, 1]} : vector<8x128xf32> to vector<1x128xf32>
    %286 = vector.broadcast %284 : vector<8x1xf32> to vector<8x128xf32>
    %287 = vector.broadcast %285 : vector<1x128xf32> to vector<8x128xf32>
    %288 = arith.mulf %286, %287 : vector<8x128xf32>
    %289 = arith.addf %283, %288 : vector<8x128xf32>
    %290 = vector.extract_strided_slice %267 {offsets = [0, 3], sizes = [8, 1], strides = [1, 1]} : vector<8x4xf32> to vector<8x1xf32>
    %291 = vector.extract_strided_slice %217 {offsets = [3, 0], sizes = [1, 128], strides = [1, 1]} : vector<8x128xf32> to vector<1x128xf32>
    %292 = vector.broadcast %290 : vector<8x1xf32> to vector<8x128xf32>
    %293 = vector.broadcast %291 : vector<1x128xf32> to vector<8x128xf32>
    %294 = arith.mulf %292, %293 : vector<8x128xf32>
    %295 = arith.addf %289, %294 : vector<8x128xf32>
    %296 = math.tanh %295 : vector<8x128xf32>
    %cst_70 = arith.constant 5.000000e-01 : f32
    %297 = vector.broadcast %cst_70 : f32 to vector<8x128xf32>
    %298 = arith.mulf %297, %295 : vector<8x128xf32>
    %299 = math.tanh %298 : vector<8x128xf32>
    %cst_71 = arith.constant 1.000000e+00 : f32
    %300 = vector.broadcast %cst_71 : f32 to vector<8x128xf32>
    %301 = arith.addf %299, %300 : vector<8x128xf32>
    %cst_72 = arith.constant 5.000000e-01 : f32
    %302 = vector.broadcast %cst_72 : f32 to vector<8x128xf32>
    %303 = arith.mulf %302, %301 : vector<8x128xf32>
    %304 = arith.select %222, %296, %303 : vector<8x128xi1>, vector<8x128xf32>
    %305 = vector.extract_strided_slice %304 {offsets = [0, 0], sizes = [8, 4], strides = [1, 1]} : vector<8x128xf32> to vector<8x4xf32>
    %306 = vector.extract_strided_slice %304 {offsets = [0, 4], sizes = [8, 4], strides = [1, 1]} : vector<8x128xf32> to vector<8x4xf32>
    %307 = vector.extract_strided_slice %304 {offsets = [0, 8], sizes = [8, 4], strides = [1, 1]} : vector<8x128xf32> to vector<8x4xf32>
    %308 = vector.extract_strided_slice %304 {offsets = [0, 12], sizes = [8, 4], strides = [1, 1]} : vector<8x128xf32> to vector<8x4xf32>
    %309 = arith.mulf %306, %265 : vector<8x4xf32>
    %310 = arith.mulf %305, %307 : vector<8x4xf32>
    %311 = arith.addf %309, %310 : vector<8x4xf32>
    %312 = math.tanh %311 : vector<8x4xf32>
    %313 = arith.mulf %308, %312 : vector<8x4xf32>
    %314 = tpu.concatenate %313, %223 in 1 : vector<8x4xf32>, vector<8x124xf32> -> vector<8x128xf32>
    %c1_73 = arith.constant 1 : index
    %c0_74 = arith.constant 0 : index
    %c0_75 = arith.constant 0 : index
    %315 = vector.load %arg6[%c1_73, %c0_74, %c0_75] : memref<8x8x128xf32, #tpu.memory_space<vmem>>, vector<1x8x128xf32>
    %316 = vector.shape_cast %315 : vector<1x8x128xf32> to vector<8x128xf32>
    %317 = vector.shape_cast %314 : vector<8x128xf32> to vector<1x8x128xf32>
    tpu.vector_store %arg6[%c1_73, %c0_74, %c0_75], %317 {strides = array<i32>} : memref<8x8x128xf32, #tpu.memory_space<vmem>>, vector<1x8x128xf32>,
    %318 = vector.extract_strided_slice %313 {offsets = [0, 0], sizes = [8, 1], strides = [1, 1]} : vector<8x4xf32> to vector<8x1xf32>
    %319 = vector.extract_strided_slice %217 {offsets = [0, 0], sizes = [1, 128], strides = [1, 1]} : vector<8x128xf32> to vector<1x128xf32>
    %320 = vector.broadcast %318 : vector<8x1xf32> to vector<8x128xf32>
    %321 = vector.broadcast %319 : vector<1x128xf32> to vector<8x128xf32>
    %322 = arith.mulf %320, %321 : vector<8x128xf32>
    %323 = arith.addf %216, %322 : vector<8x128xf32>
    %324 = vector.extract_strided_slice %313 {offsets = [0, 1], sizes = [8, 1], strides = [1, 1]} : vector<8x4xf32> to vector<8x1xf32>
    %325 = vector.extract_strided_slice %217 {offsets = [1, 0], sizes = [1, 128], strides = [1, 1]} : vector<8x128xf32> to vector<1x128xf32>
    %326 = vector.broadcast %324 : vector<8x1xf32> to vector<8x128xf32>
    %327 = vector.broadcast %325 : vector<1x128xf32> to vector<8x128xf32>
    %328 = arith.mulf %326, %327 : vector<8x128xf32>
    %329 = arith.addf %323, %328 : vector<8x128xf32>
    %330 = vector.extract_strided_slice %313 {offsets = [0, 2], sizes = [8, 1], strides = [1, 1]} : vector<8x4xf32> to vector<8x1xf32>
    %331 = vector.extract_strided_slice %217 {offsets = [2, 0], sizes = [1, 128], strides = [1, 1]} : vector<8x128xf32> to vector<1x128xf32>
    %332 = vector.broadcast %330 : vector<8x1xf32> to vector<8x128xf32>
    %333 = vector.broadcast %331 : vector<1x128xf32> to vector<8x128xf32>
    %334 = arith.mulf %332, %333 : vector<8x128xf32>
    %335 = arith.addf %329, %334 : vector<8x128xf32>
    %336 = vector.extract_strided_slice %313 {offsets = [0, 3], sizes = [8, 1], strides = [1, 1]} : vector<8x4xf32> to vector<8x1xf32>
    %337 = vector.extract_strided_slice %217 {offsets = [3, 0], sizes = [1, 128], strides = [1, 1]} : vector<8x128xf32> to vector<1x128xf32>
    %338 = vector.broadcast %336 : vector<8x1xf32> to vector<8x128xf32>
    %339 = vector.broadcast %337 : vector<1x128xf32> to vector<8x128xf32>
    %340 = arith.mulf %338, %339 : vector<8x128xf32>
    %341 = arith.addf %335, %340 : vector<8x128xf32>
    %342 = math.tanh %341 : vector<8x128xf32>
    %cst_76 = arith.constant 5.000000e-01 : f32
    %343 = vector.broadcast %cst_76 : f32 to vector<8x128xf32>
    %344 = arith.mulf %343, %341 : vector<8x128xf32>
    %345 = math.tanh %344 : vector<8x128xf32>
    %cst_77 = arith.constant 1.000000e+00 : f32
    %346 = vector.broadcast %cst_77 : f32 to vector<8x128xf32>
    %347 = arith.addf %345, %346 : vector<8x128xf32>
    %cst_78 = arith.constant 5.000000e-01 : f32
    %348 = vector.broadcast %cst_78 : f32 to vector<8x128xf32>
    %349 = arith.mulf %348, %347 : vector<8x128xf32>
    %350 = arith.select %222, %342, %349 : vector<8x128xi1>, vector<8x128xf32>
    %351 = vector.extract_strided_slice %350 {offsets = [0, 0], sizes = [8, 4], strides = [1, 1]} : vector<8x128xf32> to vector<8x4xf32>
    %352 = vector.extract_strided_slice %350 {offsets = [0, 4], sizes = [8, 4], strides = [1, 1]} : vector<8x128xf32> to vector<8x4xf32>
    %353 = vector.extract_strided_slice %350 {offsets = [0, 8], sizes = [8, 4], strides = [1, 1]} : vector<8x128xf32> to vector<8x4xf32>
    %354 = vector.extract_strided_slice %350 {offsets = [0, 12], sizes = [8, 4], strides = [1, 1]} : vector<8x128xf32> to vector<8x4xf32>
    %355 = arith.mulf %352, %311 : vector<8x4xf32>
    %356 = arith.mulf %351, %353 : vector<8x4xf32>
    %357 = arith.addf %355, %356 : vector<8x4xf32>
    %358 = math.tanh %357 : vector<8x4xf32>
    %359 = arith.mulf %354, %358 : vector<8x4xf32>
    %360 = tpu.concatenate %359, %223 in 1 : vector<8x4xf32>, vector<8x124xf32> -> vector<8x128xf32>
    %c2_79 = arith.constant 2 : index
    %c0_80 = arith.constant 0 : index
    %c0_81 = arith.constant 0 : index
    %361 = vector.load %arg6[%c2_79, %c0_80, %c0_81] : memref<8x8x128xf32, #tpu.memory_space<vmem>>, vector<1x8x128xf32>
    %362 = vector.shape_cast %361 : vector<1x8x128xf32> to vector<8x128xf32>
    %363 = vector.shape_cast %360 : vector<8x128xf32> to vector<1x8x128xf32>
    tpu.vector_store %arg6[%c2_79, %c0_80, %c0_81], %363 {strides = array<i32>} : memref<8x8x128xf32, #tpu.memory_space<vmem>>, vector<1x8x128xf32>,
    %364 = vector.extract_strided_slice %359 {offsets = [0, 0], sizes = [8, 1], strides = [1, 1]} : vector<8x4xf32> to vector<8x1xf32>
    %365 = vector.extract_strided_slice %217 {offsets = [0, 0], sizes = [1, 128], strides = [1, 1]} : vector<8x128xf32> to vector<1x128xf32>
    %366 = vector.broadcast %364 : vector<8x1xf32> to vector<8x128xf32>
    %367 = vector.broadcast %365 : vector<1x128xf32> to vector<8x128xf32>
    %368 = arith.mulf %366, %367 : vector<8x128xf32>
    %369 = arith.addf %216, %368 : vector<8x128xf32>
    %370 = vector.extract_strided_slice %359 {offsets = [0, 1], sizes = [8, 1], strides = [1, 1]} : vector<8x4xf32> to vector<8x1xf32>
    %371 = vector.extract_strided_slice %217 {offsets = [1, 0], sizes = [1, 128], strides = [1, 1]} : vector<8x128xf32> to vector<1x128xf32>
    %372 = vector.broadcast %370 : vector<8x1xf32> to vector<8x128xf32>
    %373 = vector.broadcast %371 : vector<1x128xf32> to vector<8x128xf32>
    %374 = arith.mulf %372, %373 : vector<8x128xf32>
    %375 = arith.addf %369, %374 : vector<8x128xf32>
    %376 = vector.extract_strided_slice %359 {offsets = [0, 2], sizes = [8, 1], strides = [1, 1]} : vector<8x4xf32> to vector<8x1xf32>
    %377 = vector.extract_strided_slice %217 {offsets = [2, 0], sizes = [1, 128], strides = [1, 1]} : vector<8x128xf32> to vector<1x128xf32>
    %378 = vector.broadcast %376 : vector<8x1xf32> to vector<8x128xf32>
    %379 = vector.broadcast %377 : vector<1x128xf32> to vector<8x128xf32>
    %380 = arith.mulf %378, %379 : vector<8x128xf32>
    %381 = arith.addf %375, %380 : vector<8x128xf32>
    %382 = vector.extract_strided_slice %359 {offsets = [0, 3], sizes = [8, 1], strides = [1, 1]} : vector<8x4xf32> to vector<8x1xf32>
    %383 = vector.extract_strided_slice %217 {offsets = [3, 0], sizes = [1, 128], strides = [1, 1]} : vector<8x128xf32> to vector<1x128xf32>
    %384 = vector.broadcast %382 : vector<8x1xf32> to vector<8x128xf32>
    %385 = vector.broadcast %383 : vector<1x128xf32> to vector<8x128xf32>
    %386 = arith.mulf %384, %385 : vector<8x128xf32>
    %387 = arith.addf %381, %386 : vector<8x128xf32>
    %388 = math.tanh %387 : vector<8x128xf32>
    %cst_82 = arith.constant 5.000000e-01 : f32
    %389 = vector.broadcast %cst_82 : f32 to vector<8x128xf32>
    %390 = arith.mulf %389, %387 : vector<8x128xf32>
    %391 = math.tanh %390 : vector<8x128xf32>
    %cst_83 = arith.constant 1.000000e+00 : f32
    %392 = vector.broadcast %cst_83 : f32 to vector<8x128xf32>
    %393 = arith.addf %391, %392 : vector<8x128xf32>
    %cst_84 = arith.constant 5.000000e-01 : f32
    %394 = vector.broadcast %cst_84 : f32 to vector<8x128xf32>
    %395 = arith.mulf %394, %393 : vector<8x128xf32>
    %396 = arith.select %222, %388, %395 : vector<8x128xi1>, vector<8x128xf32>
    %397 = vector.extract_strided_slice %396 {offsets = [0, 0], sizes = [8, 4], strides = [1, 1]} : vector<8x128xf32> to vector<8x4xf32>
    %398 = vector.extract_strided_slice %396 {offsets = [0, 4], sizes = [8, 4], strides = [1, 1]} : vector<8x128xf32> to vector<8x4xf32>
    %399 = vector.extract_strided_slice %396 {offsets = [0, 8], sizes = [8, 4], strides = [1, 1]} : vector<8x128xf32> to vector<8x4xf32>
    %400 = vector.extract_strided_slice %396 {offsets = [0, 12], sizes = [8, 4], strides = [1, 1]} : vector<8x128xf32> to vector<8x4xf32>
    %401 = arith.mulf %398, %357 : vector<8x4xf32>
    %402 = arith.mulf %397, %399 : vector<8x4xf32>
    %403 = arith.addf %401, %402 : vector<8x4xf32>
    %404 = math.tanh %403 : vector<8x4xf32>
    %405 = arith.mulf %400, %404 : vector<8x4xf32>
    %406 = tpu.concatenate %405, %223 in 1 : vector<8x4xf32>, vector<8x124xf32> -> vector<8x128xf32>
    %c3_85 = arith.constant 3 : index
    %c0_86 = arith.constant 0 : index
    %c0_87 = arith.constant 0 : index
    %407 = vector.load %arg6[%c3_85, %c0_86, %c0_87] : memref<8x8x128xf32, #tpu.memory_space<vmem>>, vector<1x8x128xf32>
    %408 = vector.shape_cast %407 : vector<1x8x128xf32> to vector<8x128xf32>
    %409 = vector.shape_cast %406 : vector<8x128xf32> to vector<1x8x128xf32>
    tpu.vector_store %arg6[%c3_85, %c0_86, %c0_87], %409 {strides = array<i32>} : memref<8x8x128xf32, #tpu.memory_space<vmem>>, vector<1x8x128xf32>,
    %410 = vector.extract_strided_slice %405 {offsets = [0, 0], sizes = [8, 1], strides = [1, 1]} : vector<8x4xf32> to vector<8x1xf32>
    %411 = vector.extract_strided_slice %217 {offsets = [0, 0], sizes = [1, 128], strides = [1, 1]} : vector<8x128xf32> to vector<1x128xf32>
    %412 = vector.broadcast %410 : vector<8x1xf32> to vector<8x128xf32>
    %413 = vector.broadcast %411 : vector<1x128xf32> to vector<8x128xf32>
    %414 = arith.mulf %412, %413 : vector<8x128xf32>
    %415 = arith.addf %216, %414 : vector<8x128xf32>
    %416 = vector.extract_strided_slice %405 {offsets = [0, 1], sizes = [8, 1], strides = [1, 1]} : vector<8x4xf32> to vector<8x1xf32>
    %417 = vector.extract_strided_slice %217 {offsets = [1, 0], sizes = [1, 128], strides = [1, 1]} : vector<8x128xf32> to vector<1x128xf32>
    %418 = vector.broadcast %416 : vector<8x1xf32> to vector<8x128xf32>
    %419 = vector.broadcast %417 : vector<1x128xf32> to vector<8x128xf32>
    %420 = arith.mulf %418, %419 : vector<8x128xf32>
    %421 = arith.addf %415, %420 : vector<8x128xf32>
    %422 = vector.extract_strided_slice %405 {offsets = [0, 2], sizes = [8, 1], strides = [1, 1]} : vector<8x4xf32> to vector<8x1xf32>
    %423 = vector.extract_strided_slice %217 {offsets = [2, 0], sizes = [1, 128], strides = [1, 1]} : vector<8x128xf32> to vector<1x128xf32>
    %424 = vector.broadcast %422 : vector<8x1xf32> to vector<8x128xf32>
    %425 = vector.broadcast %423 : vector<1x128xf32> to vector<8x128xf32>
    %426 = arith.mulf %424, %425 : vector<8x128xf32>
    %427 = arith.addf %421, %426 : vector<8x128xf32>
    %428 = vector.extract_strided_slice %405 {offsets = [0, 3], sizes = [8, 1], strides = [1, 1]} : vector<8x4xf32> to vector<8x1xf32>
    %429 = vector.extract_strided_slice %217 {offsets = [3, 0], sizes = [1, 128], strides = [1, 1]} : vector<8x128xf32> to vector<1x128xf32>
    %430 = vector.broadcast %428 : vector<8x1xf32> to vector<8x128xf32>
    %431 = vector.broadcast %429 : vector<1x128xf32> to vector<8x128xf32>
    %432 = arith.mulf %430, %431 : vector<8x128xf32>
    %433 = arith.addf %427, %432 : vector<8x128xf32>
    %434 = math.tanh %433 : vector<8x128xf32>
    %cst_88 = arith.constant 5.000000e-01 : f32
    %435 = vector.broadcast %cst_88 : f32 to vector<8x128xf32>
    %436 = arith.mulf %435, %433 : vector<8x128xf32>
    %437 = math.tanh %436 : vector<8x128xf32>
    %cst_89 = arith.constant 1.000000e+00 : f32
    %438 = vector.broadcast %cst_89 : f32 to vector<8x128xf32>
    %439 = arith.addf %437, %438 : vector<8x128xf32>
    %cst_90 = arith.constant 5.000000e-01 : f32
    %440 = vector.broadcast %cst_90 : f32 to vector<8x128xf32>
    %441 = arith.mulf %440, %439 : vector<8x128xf32>
    %442 = arith.select %222, %434, %441 : vector<8x128xi1>, vector<8x128xf32>
    %443 = vector.extract_strided_slice %442 {offsets = [0, 0], sizes = [8, 4], strides = [1, 1]} : vector<8x128xf32> to vector<8x4xf32>
    %444 = vector.extract_strided_slice %442 {offsets = [0, 4], sizes = [8, 4], strides = [1, 1]} : vector<8x128xf32> to vector<8x4xf32>
    %445 = vector.extract_strided_slice %442 {offsets = [0, 8], sizes = [8, 4], strides = [1, 1]} : vector<8x128xf32> to vector<8x4xf32>
    %446 = vector.extract_strided_slice %442 {offsets = [0, 12], sizes = [8, 4], strides = [1, 1]} : vector<8x128xf32> to vector<8x4xf32>
    %447 = arith.mulf %444, %403 : vector<8x4xf32>
    %448 = arith.mulf %443, %445 : vector<8x4xf32>
    %449 = arith.addf %447, %448 : vector<8x4xf32>
    %450 = math.tanh %449 : vector<8x4xf32>
    %451 = arith.mulf %446, %450 : vector<8x4xf32>
    %452 = tpu.concatenate %451, %223 in 1 : vector<8x4xf32>, vector<8x124xf32> -> vector<8x128xf32>
    %c4_91 = arith.constant 4 : index
    %c0_92 = arith.constant 0 : index
    %c0_93 = arith.constant 0 : index
    %453 = vector.load %arg6[%c4_91, %c0_92, %c0_93] : memref<8x8x128xf32, #tpu.memory_space<vmem>>, vector<1x8x128xf32>
    %454 = vector.shape_cast %453 : vector<1x8x128xf32> to vector<8x128xf32>
    %455 = vector.shape_cast %452 : vector<8x128xf32> to vector<1x8x128xf32>
    tpu.vector_store %arg6[%c4_91, %c0_92, %c0_93], %455 {strides = array<i32>} : memref<8x8x128xf32, #tpu.memory_space<vmem>>, vector<1x8x128xf32>,
    %456 = vector.extract_strided_slice %451 {offsets = [0, 0], sizes = [8, 1], strides = [1, 1]} : vector<8x4xf32> to vector<8x1xf32>
    %457 = vector.extract_strided_slice %217 {offsets = [0, 0], sizes = [1, 128], strides = [1, 1]} : vector<8x128xf32> to vector<1x128xf32>
    %458 = vector.broadcast %456 : vector<8x1xf32> to vector<8x128xf32>
    %459 = vector.broadcast %457 : vector<1x128xf32> to vector<8x128xf32>
    %460 = arith.mulf %458, %459 : vector<8x128xf32>
    %461 = arith.addf %216, %460 : vector<8x128xf32>
    %462 = vector.extract_strided_slice %451 {offsets = [0, 1], sizes = [8, 1], strides = [1, 1]} : vector<8x4xf32> to vector<8x1xf32>
    %463 = vector.extract_strided_slice %217 {offsets = [1, 0], sizes = [1, 128], strides = [1, 1]} : vector<8x128xf32> to vector<1x128xf32>
    %464 = vector.broadcast %462 : vector<8x1xf32> to vector<8x128xf32>
    %465 = vector.broadcast %463 : vector<1x128xf32> to vector<8x128xf32>
    %466 = arith.mulf %464, %465 : vector<8x128xf32>
    %467 = arith.addf %461, %466 : vector<8x128xf32>
    %468 = vector.extract_strided_slice %451 {offsets = [0, 2], sizes = [8, 1], strides = [1, 1]} : vector<8x4xf32> to vector<8x1xf32>
    %469 = vector.extract_strided_slice %217 {offsets = [2, 0], sizes = [1, 128], strides = [1, 1]} : vector<8x128xf32> to vector<1x128xf32>
    %470 = vector.broadcast %468 : vector<8x1xf32> to vector<8x128xf32>
    %471 = vector.broadcast %469 : vector<1x128xf32> to vector<8x128xf32>
    %472 = arith.mulf %470, %471 : vector<8x128xf32>
    %473 = arith.addf %467, %472 : vector<8x128xf32>
    %474 = vector.extract_strided_slice %451 {offsets = [0, 3], sizes = [8, 1], strides = [1, 1]} : vector<8x4xf32> to vector<8x1xf32>
    %475 = vector.extract_strided_slice %217 {offsets = [3, 0], sizes = [1, 128], strides = [1, 1]} : vector<8x128xf32> to vector<1x128xf32>
    %476 = vector.broadcast %474 : vector<8x1xf32> to vector<8x128xf32>
    %477 = vector.broadcast %475 : vector<1x128xf32> to vector<8x128xf32>
    %478 = arith.mulf %476, %477 : vector<8x128xf32>
    %479 = arith.addf %473, %478 : vector<8x128xf32>
    %480 = math.tanh %479 : vector<8x128xf32>
    %cst_94 = arith.constant 5.000000e-01 : f32
    %481 = vector.broadcast %cst_94 : f32 to vector<8x128xf32>
    %482 = arith.mulf %481, %479 : vector<8x128xf32>
    %483 = math.tanh %482 : vector<8x128xf32>
    %cst_95 = arith.constant 1.000000e+00 : f32
    %484 = vector.broadcast %cst_95 : f32 to vector<8x128xf32>
    %485 = arith.addf %483, %484 : vector<8x128xf32>
    %cst_96 = arith.constant 5.000000e-01 : f32
    %486 = vector.broadcast %cst_96 : f32 to vector<8x128xf32>
    %487 = arith.mulf %486, %485 : vector<8x128xf32>
    %488 = arith.select %222, %480, %487 : vector<8x128xi1>, vector<8x128xf32>
    %489 = vector.extract_strided_slice %488 {offsets = [0, 0], sizes = [8, 4], strides = [1, 1]} : vector<8x128xf32> to vector<8x4xf32>
    %490 = vector.extract_strided_slice %488 {offsets = [0, 4], sizes = [8, 4], strides = [1, 1]} : vector<8x128xf32> to vector<8x4xf32>
    %491 = vector.extract_strided_slice %488 {offsets = [0, 8], sizes = [8, 4], strides = [1, 1]} : vector<8x128xf32> to vector<8x4xf32>
    %492 = vector.extract_strided_slice %488 {offsets = [0, 12], sizes = [8, 4], strides = [1, 1]} : vector<8x128xf32> to vector<8x4xf32>
    %493 = arith.mulf %490, %449 : vector<8x4xf32>
    %494 = arith.mulf %489, %491 : vector<8x4xf32>
    %495 = arith.addf %493, %494 : vector<8x4xf32>
    %496 = math.tanh %495 : vector<8x4xf32>
    %497 = arith.mulf %492, %496 : vector<8x4xf32>
    %498 = tpu.concatenate %497, %223 in 1 : vector<8x4xf32>, vector<8x124xf32> -> vector<8x128xf32>
    %c5_97 = arith.constant 5 : index
    %c0_98 = arith.constant 0 : index
    %c0_99 = arith.constant 0 : index
    %499 = vector.load %arg6[%c5_97, %c0_98, %c0_99] : memref<8x8x128xf32, #tpu.memory_space<vmem>>, vector<1x8x128xf32>
    %500 = vector.shape_cast %499 : vector<1x8x128xf32> to vector<8x128xf32>
    %501 = vector.shape_cast %498 : vector<8x128xf32> to vector<1x8x128xf32>
    tpu.vector_store %arg6[%c5_97, %c0_98, %c0_99], %501 {strides = array<i32>} : memref<8x8x128xf32, #tpu.memory_space<vmem>>, vector<1x8x128xf32>,
    %502 = vector.extract_strided_slice %497 {offsets = [0, 0], sizes = [8, 1], strides = [1, 1]} : vector<8x4xf32> to vector<8x1xf32>
    %503 = vector.extract_strided_slice %217 {offsets = [0, 0], sizes = [1, 128], strides = [1, 1]} : vector<8x128xf32> to vector<1x128xf32>
    %504 = vector.broadcast %502 : vector<8x1xf32> to vector<8x128xf32>
    %505 = vector.broadcast %503 : vector<1x128xf32> to vector<8x128xf32>
    %506 = arith.mulf %504, %505 : vector<8x128xf32>
    %507 = arith.addf %216, %506 : vector<8x128xf32>
    %508 = vector.extract_strided_slice %497 {offsets = [0, 1], sizes = [8, 1], strides = [1, 1]} : vector<8x4xf32> to vector<8x1xf32>
    %509 = vector.extract_strided_slice %217 {offsets = [1, 0], sizes = [1, 128], strides = [1, 1]} : vector<8x128xf32> to vector<1x128xf32>
    %510 = vector.broadcast %508 : vector<8x1xf32> to vector<8x128xf32>
    %511 = vector.broadcast %509 : vector<1x128xf32> to vector<8x128xf32>
    %512 = arith.mulf %510, %511 : vector<8x128xf32>
    %513 = arith.addf %507, %512 : vector<8x128xf32>
    %514 = vector.extract_strided_slice %497 {offsets = [0, 2], sizes = [8, 1], strides = [1, 1]} : vector<8x4xf32> to vector<8x1xf32>
    %515 = vector.extract_strided_slice %217 {offsets = [2, 0], sizes = [1, 128], strides = [1, 1]} : vector<8x128xf32> to vector<1x128xf32>
    %516 = vector.broadcast %514 : vector<8x1xf32> to vector<8x128xf32>
    %517 = vector.broadcast %515 : vector<1x128xf32> to vector<8x128xf32>
    %518 = arith.mulf %516, %517 : vector<8x128xf32>
    %519 = arith.addf %513, %518 : vector<8x128xf32>
    %520 = vector.extract_strided_slice %497 {offsets = [0, 3], sizes = [8, 1], strides = [1, 1]} : vector<8x4xf32> to vector<8x1xf32>
    %521 = vector.extract_strided_slice %217 {offsets = [3, 0], sizes = [1, 128], strides = [1, 1]} : vector<8x128xf32> to vector<1x128xf32>
    %522 = vector.broadcast %520 : vector<8x1xf32> to vector<8x128xf32>
    %523 = vector.broadcast %521 : vector<1x128xf32> to vector<8x128xf32>
    %524 = arith.mulf %522, %523 : vector<8x128xf32>
    %525 = arith.addf %519, %524 : vector<8x128xf32>
    %526 = math.tanh %525 : vector<8x128xf32>
    %cst_100 = arith.constant 5.000000e-01 : f32
    %527 = vector.broadcast %cst_100 : f32 to vector<8x128xf32>
    %528 = arith.mulf %527, %525 : vector<8x128xf32>
    %529 = math.tanh %528 : vector<8x128xf32>
    %cst_101 = arith.constant 1.000000e+00 : f32
    %530 = vector.broadcast %cst_101 : f32 to vector<8x128xf32>
    %531 = arith.addf %529, %530 : vector<8x128xf32>
    %cst_102 = arith.constant 5.000000e-01 : f32
    %532 = vector.broadcast %cst_102 : f32 to vector<8x128xf32>
    %533 = arith.mulf %532, %531 : vector<8x128xf32>
    %534 = arith.select %222, %526, %533 : vector<8x128xi1>, vector<8x128xf32>
    %535 = vector.extract_strided_slice %534 {offsets = [0, 0], sizes = [8, 4], strides = [1, 1]} : vector<8x128xf32> to vector<8x4xf32>
    %536 = vector.extract_strided_slice %534 {offsets = [0, 4], sizes = [8, 4], strides = [1, 1]} : vector<8x128xf32> to vector<8x4xf32>
    %537 = vector.extract_strided_slice %534 {offsets = [0, 8], sizes = [8, 4], strides = [1, 1]} : vector<8x128xf32> to vector<8x4xf32>
    %538 = vector.extract_strided_slice %534 {offsets = [0, 12], sizes = [8, 4], strides = [1, 1]} : vector<8x128xf32> to vector<8x4xf32>
    %539 = arith.mulf %536, %495 : vector<8x4xf32>
    %540 = arith.mulf %535, %537 : vector<8x4xf32>
    %541 = arith.addf %539, %540 : vector<8x4xf32>
    %542 = math.tanh %541 : vector<8x4xf32>
    %543 = arith.mulf %538, %542 : vector<8x4xf32>
    %544 = tpu.concatenate %543, %223 in 1 : vector<8x4xf32>, vector<8x124xf32> -> vector<8x128xf32>
    %c6_103 = arith.constant 6 : index
    %c0_104 = arith.constant 0 : index
    %c0_105 = arith.constant 0 : index
    %545 = vector.load %arg6[%c6_103, %c0_104, %c0_105] : memref<8x8x128xf32, #tpu.memory_space<vmem>>, vector<1x8x128xf32>
    %546 = vector.shape_cast %545 : vector<1x8x128xf32> to vector<8x128xf32>
    %547 = vector.shape_cast %544 : vector<8x128xf32> to vector<1x8x128xf32>
    tpu.vector_store %arg6[%c6_103, %c0_104, %c0_105], %547 {strides = array<i32>} : memref<8x8x128xf32, #tpu.memory_space<vmem>>, vector<1x8x128xf32>,
    %548 = vector.extract_strided_slice %543 {offsets = [0, 0], sizes = [8, 1], strides = [1, 1]} : vector<8x4xf32> to vector<8x1xf32>
    %549 = vector.extract_strided_slice %217 {offsets = [0, 0], sizes = [1, 128], strides = [1, 1]} : vector<8x128xf32> to vector<1x128xf32>
    %550 = vector.broadcast %548 : vector<8x1xf32> to vector<8x128xf32>
    %551 = vector.broadcast %549 : vector<1x128xf32> to vector<8x128xf32>
    %552 = arith.mulf %550, %551 : vector<8x128xf32>
    %553 = arith.addf %216, %552 : vector<8x128xf32>
    %554 = vector.extract_strided_slice %543 {offsets = [0, 1], sizes = [8, 1], strides = [1, 1]} : vector<8x4xf32> to vector<8x1xf32>
    %555 = vector.extract_strided_slice %217 {offsets = [1, 0], sizes = [1, 128], strides = [1, 1]} : vector<8x128xf32> to vector<1x128xf32>
    %556 = vector.broadcast %554 : vector<8x1xf32> to vector<8x128xf32>
    %557 = vector.broadcast %555 : vector<1x128xf32> to vector<8x128xf32>
    %558 = arith.mulf %556, %557 : vector<8x128xf32>
    %559 = arith.addf %553, %558 : vector<8x128xf32>
    %560 = vector.extract_strided_slice %543 {offsets = [0, 2], sizes = [8, 1], strides = [1, 1]} : vector<8x4xf32> to vector<8x1xf32>
    %561 = vector.extract_strided_slice %217 {offsets = [2, 0], sizes = [1, 128], strides = [1, 1]} : vector<8x128xf32> to vector<1x128xf32>
    %562 = vector.broadcast %560 : vector<8x1xf32> to vector<8x128xf32>
    %563 = vector.broadcast %561 : vector<1x128xf32> to vector<8x128xf32>
    %564 = arith.mulf %562, %563 : vector<8x128xf32>
    %565 = arith.addf %559, %564 : vector<8x128xf32>
    %566 = vector.extract_strided_slice %543 {offsets = [0, 3], sizes = [8, 1], strides = [1, 1]} : vector<8x4xf32> to vector<8x1xf32>
    %567 = vector.extract_strided_slice %217 {offsets = [3, 0], sizes = [1, 128], strides = [1, 1]} : vector<8x128xf32> to vector<1x128xf32>
    %568 = vector.broadcast %566 : vector<8x1xf32> to vector<8x128xf32>
    %569 = vector.broadcast %567 : vector<1x128xf32> to vector<8x128xf32>
    %570 = arith.mulf %568, %569 : vector<8x128xf32>
    %571 = arith.addf %565, %570 : vector<8x128xf32>
    %572 = math.tanh %571 : vector<8x128xf32>
    %cst_106 = arith.constant 5.000000e-01 : f32
    %573 = vector.broadcast %cst_106 : f32 to vector<8x128xf32>
    %574 = arith.mulf %573, %571 : vector<8x128xf32>
    %575 = math.tanh %574 : vector<8x128xf32>
    %cst_107 = arith.constant 1.000000e+00 : f32
    %576 = vector.broadcast %cst_107 : f32 to vector<8x128xf32>
    %577 = arith.addf %575, %576 : vector<8x128xf32>
    %cst_108 = arith.constant 5.000000e-01 : f32
    %578 = vector.broadcast %cst_108 : f32 to vector<8x128xf32>
    %579 = arith.mulf %578, %577 : vector<8x128xf32>
    %580 = arith.select %222, %572, %579 : vector<8x128xi1>, vector<8x128xf32>
    %581 = vector.extract_strided_slice %580 {offsets = [0, 0], sizes = [8, 4], strides = [1, 1]} : vector<8x128xf32> to vector<8x4xf32>
    %582 = vector.extract_strided_slice %580 {offsets = [0, 4], sizes = [8, 4], strides = [1, 1]} : vector<8x128xf32> to vector<8x4xf32>
    %583 = vector.extract_strided_slice %580 {offsets = [0, 8], sizes = [8, 4], strides = [1, 1]} : vector<8x128xf32> to vector<8x4xf32>
    %584 = vector.extract_strided_slice %580 {offsets = [0, 12], sizes = [8, 4], strides = [1, 1]} : vector<8x128xf32> to vector<8x4xf32>
    %585 = arith.mulf %582, %541 : vector<8x4xf32>
    %586 = arith.mulf %581, %583 : vector<8x4xf32>
    %587 = arith.addf %585, %586 : vector<8x4xf32>
    %588 = math.tanh %587 : vector<8x4xf32>
    %589 = arith.mulf %584, %588 : vector<8x4xf32>
    %590 = tpu.concatenate %589, %223 in 1 : vector<8x4xf32>, vector<8x124xf32> -> vector<8x128xf32>
    %c7_109 = arith.constant 7 : index
    %c0_110 = arith.constant 0 : index
    %c0_111 = arith.constant 0 : index
    %591 = vector.load %arg6[%c7_109, %c0_110, %c0_111] : memref<8x8x128xf32, #tpu.memory_space<vmem>>, vector<1x8x128xf32>
    %592 = vector.shape_cast %591 : vector<1x8x128xf32> to vector<8x128xf32>
    %593 = vector.shape_cast %590 : vector<8x128xf32> to vector<1x8x128xf32>
    tpu.vector_store %arg6[%c7_109, %c0_110, %c0_111], %593 {strides = array<i32>} : memref<8x8x128xf32, #tpu.memory_space<vmem>>, vector<1x8x128xf32>,
    return
  }
}

</mosaic_0001>

<bundles_post_ra>
// kernel: lstm_autoencoder_forward.1
= control target key start
LH: loop header
LB: loop body
LE: loop exit
PB: predicated region body
PF: predicated region fallthrough
CT: control target
= control target key end

     0   :  { %11 = vsyncpa [#allocation3], 0  ;;  %s2269_s21 = smov [#allocation2]   ;;  %s2855_s0 = inlined_call_operand.vmem [shape: f32[8,8,128], index: 0, kind: input, shape index: {}]   ;;  %s2856_s1 = inlined_call_operand.vmem [shape: f32[128,128], index: 1, kind: input, shape index: {}]   ;;  %s2857_s2 = inlined_call_operand.vmem [shape: f32[1,128], index: 2, kind: input, shape index: {}]   ;;  %s2858_s3 = inlined_call_operand.hbm [shape: f32[128,128], index: 3, kind: input, shape index: {}]   ;;  %s2859_s4 = inlined_call_operand.vmem [shape: f32[8,128], index: 4, kind: input, shape index: {}]   ;;  %s2860_s5 = inlined_call_operand.vmem [shape: f32[1,128], index: 5, kind: input, shape index: {}]   ;;  %s2861_s6 = inlined_call_operand.vmem [shape: f32[8,8,128], index: 6, kind: output, shape index: {}]  }
   0x1   :  { %s23_s22 = sshll.u32 %s2269_s21, 4  ;;  %s2245_s25 = scalar_lea.hbm %s2858_s3, 2048  ;;  %s24_s22 = int_to_ptr.vmem [resolvable:$true] %s23_s22 }
   0x2   :  { %p2246_p0 = scmp.ne.s32.totalorder %s2858_s3, %s2245_s25  ;;  %p2249_p1 = scmp.lt.u32.totalorder %s2245_s25, %s2858_s3 }
   0x4   :  { %p2251_p2 = pnand %p2249_p1, %p2246_p0 }
   0x6   :  { %2254 = shalt.err (!%p2251_p2)
}
   0x7   :  { %s2255_s30 = scalar_lea.vmem %s24_s22, 2048  ;;  %p2260_p4 = scmp.lt.s32.totalorder %s24_s22, %s24_s22 }
   0x8   :  { %p2256_p3 = scmp.ne.s32.totalorder %s24_s22, %s2255_s30  ;;  %p2261_p5 = scmp.lt.s32.totalorder %s2255_s30, %s2255_s30 }
   0xa   :  { %p2262_p6 = por %p2261_p5, %p2260_p4 }
   0xc   :  { %p2263_p7 = pnand %p2262_p6, %p2256_p3 }
   0xe   :  { %2266 = shalt.err (!%p2263_p7)
}
   0xf   :  { %s2270_s7 = smov 128   ;;  %s2271_s8 = smov 8  }
  0x10   :  { %29 = dma.hbm_to_vmem [thread:$0]  %s2858_s3, 2048, %s24_s22, [#allocation3], %s2270_s7, %s2270_s7, %s2271_s8  }
  0x11   :  { %2267 = dma.done.wait [#allocation3], 2048  }
  0x12   :  { %2268 = vsyncadd [#allocation3], 4294965248  ;;  %v2272_v0 = vmov 0.0|0.0   ;;  %vm2273_vm0 = vmmov 0   ;;  %v2274_v1 = vmov 0.0   ;;  %v39_v2 = vld [vmem:[%s2856_s1] sm:$0xff]  ;;  %v37_v32 = vlaneseq }
  0x13   :  { %1892 = vmatprep.subr.bf16.mxu0 %v2272_v0  ;;  %1609 = vmatprep.mubr.msk.f32.mxu0 %vm2273_vm0, %v2274_v1  ;;  %v40_v3 = vld [vmem:[%s2856_s1 + $0x8] sm:$0xff]  ;;  %v41_v4 = vld [vmem:[%s2856_s1 + $0x10] sm:$0xff]  ;;  %v42_v6 = vld [vmem:[%s2856_s1 + $0x18] sm:$0xff]  ;;  %s2276_s21 = smov 32   ;;  %vm164_vm4 = vcmask 261120   ;;  %s2283_s15 = smov 116  }
  0x14   :  { %1916 = vmatprep.subr.bf16.mxu1 %v2272_v0  ;;  %1644 = vmatprep.mubr.msk.f32.mxu1 %vm2273_vm0, %v2274_v1  ;;  %v2347_v5 = vpack.c.bf16 %v40_v3, %v39_v2  ;;  %v2353_v7 = vpack.c.bf16 %v42_v6, %v41_v4  ;;  %v43_v8 = vld [vmem:[%s2856_s1 + $0x20] sm:$0xff]  ;;  %v44_v9 = vld [vmem:[%s2856_s1 + $0x28] sm:$0xff]  ;;  %v45_v11 = vld [vmem:[%s2856_s1 + $0x30] sm:$0xff]  ;;  %v2462_v33 = vand.u32 127, %v37_v32  ;;  %vm1021_vm8 = vcmask 31744  }
  0x15   :  { %v2365_v10 = vpack.c.bf16 %v44_v9, %v43_v8  ;;  %v46_v12 = vld [vmem:[%s2856_s1 + $0x38] sm:$0xff]  ;;  %v47_v14 = vld [vmem:[%s2856_s1 + $0x40] sm:$0xff]  ;;  %v48_v15 = vld [vmem:[%s2856_s1 + $0x48] sm:$0xff] }
  0x16   :  { %1894 = vmatpush3.bf16.msra.mxu0 %v2347_v5  ;;  %1918 = vmatpush3.bf16.msra.mxu1 %v2347_v5  ;;  %v2377_v13 = vpack.c.bf16 %v46_v12, %v45_v11  ;;  %v2389_v16 = vpack.c.bf16 %v48_v15, %v47_v14  ;;  %v49_v17 = vld [vmem:[%s2856_s1 + $0x50] sm:$0xff]  ;;  %v50_v18 = vld [vmem:[%s2856_s1 + $0x58] sm:$0xff]  ;;  %v51_v20 = vld [vmem:[%s2856_s1 + $0x60] sm:$0xff]  ;;  %vm56_vm1 = vcmp.ge.s32.totalorder %v2462_v33, 64  ;;  %vm57_vm2 = vcmp.lt.s32.totalorder %v2462_v33, 96 }
  0x17   :  { %1895 = vmatprep.subr.bf16.mxu0 %v2272_v0  ;;  %1919 = vmatprep.subr.bf16.mxu1 %v2272_v0  ;;  %v2401_v19 = vpack.c.bf16 %v50_v18, %v49_v17  ;;  %v52_v21 = vld [vmem:[%s2856_s1 + $0x68] sm:$0xff]  ;;  %v53_v23 = vld [vmem:[%s2856_s1 + $0x70] sm:$0xff]  ;;  %v54_v24 = vld [vmem:[%s2856_s1 + $0x78] sm:$0xff]  ;;  %vm967_vm5 = vcmp.ge.s32.totalorder %v2462_v33, 8  ;;  %vm968_vm6 = vcmp.lt.s32.totalorder %v2462_v33, 12 }
  0x18   :  { %v2413_v22 = vpack.c.bf16 %v52_v21, %v51_v20  ;;  %v2425_v25 = vpack.c.bf16 %v54_v24, %v53_v23  ;;  %v59_v26 = vld [vmem:[%s2855_s0] sm:$0xff]  ;;  %vm2466_vm3 = vmand %vm56_vm1, %vm57_vm2  ;;  %v1408_v48 = vld [vmem:[%s2855_s0 + $0x8] sm:$0xff] }
  0x19   :  { %v2458_v27 = vld [vmem:[%s2857_s2] ss:$0 sm:$0xff]  ;;  %s2275_s2 = smov 64   ;;  %v1409_v9 = vld [vmem:[%s2855_s0 + $0x10] sm:$0xff]  ;;  %vm2676_vm7 = vmand %vm967_vm5, %vm968_vm6 }
  0x1a   :  { %1897 = vmatpush3.bf16.msra.mxu0 %v2353_v7  ;;  %1921 = vmatpush3.bf16.msra.mxu1 %v2353_v7  ;;  %v877_v36 = vld [vmem:[#allocation2 + $0x20] sm:$0xff] }
  0x1b   :  { %1898 = vmatprep.subr.bf16.mxu0 %v2272_v0  ;;  %1922 = vmatprep.subr.bf16.mxu1 %v2272_v0 }
  0x1e   :  { %1900 = vmatpush3.bf16.msra.mxu0 %v2365_v10  ;;  %1924 = vmatpush3.bf16.msra.mxu1 %v2365_v10 }
  0x1f   :  { %1901 = vmatprep.subr.bf16.mxu0 %v2272_v0  ;;  %1925 = vmatprep.subr.bf16.mxu1 %v2272_v0 }
  0x22   :  { %1903 = vmatpush3.bf16.msra.mxu0 %v2377_v13  ;;  %1927 = vmatpush3.bf16.msra.mxu1 %v2377_v13 }
  0x23   :  { %1904 = vmatprep.subr.bf16.mxu0 %v2272_v0  ;;  %1928 = vmatprep.subr.bf16.mxu1 %v2272_v0 }
  0x26   :  { %1906 = vmatpush3.bf16.msra.mxu0 %v2389_v16  ;;  %1930 = vmatpush3.bf16.msra.mxu1 %v2389_v16 }
  0x27   :  { %1907 = vmatprep.subr.bf16.mxu0 %v2272_v0  ;;  %1931 = vmatprep.subr.bf16.mxu1 %v2272_v0 }
  0x2a   :  { %1909 = vmatpush3.bf16.msra.mxu0 %v2401_v19  ;;  %1933 = vmatpush3.bf16.msra.mxu1 %v2401_v19 }
  0x2b   :  { %1910 = vmatprep.subr.bf16.mxu0 %v2272_v0  ;;  %1934 = vmatprep.subr.bf16.mxu1 %v2272_v0 }
  0x2e   :  { %1912 = vmatpush3.bf16.msra.mxu0 %v2413_v22  ;;  %1936 = vmatpush3.bf16.msra.mxu1 %v2413_v22 }
  0x2f   :  { %1913 = vmatprep.subr.bf16.mxu0 %v2272_v0  ;;  %1937 = vmatprep.subr.bf16.mxu1 %v2272_v0 }
  0x32   :  { %1915 = vmatpush3.bf16.msra.mxu0 %v2425_v25  ;;  %1939 = vmatpush3.bf16.msra.mxu1 %v2425_v25 }
  0x33   :  { %1940 = vmatprep.subr.bf16.mxu0 %v2272_v0  ;;  %1964 = vmatprep.subr.bf16.mxu1 %v2272_v0 }
  0x35   :  { %1610 = vmatmul.mubr.f32.vlgmr.msra.gmra.mrb[0].mxu0 %v59_v26 }
  0x36   :  { %1942 = vmatpush3.bf16.msra.mxu0 %v2347_v5  ;;  %1679 = vmatprep.mubr.msk.f32.mxu0 %vm2273_vm0, %v2274_v1 }
  0x37   :  { %1943 = vmatprep.subr.bf16.mxu0 %v2272_v0 }
  0x3a   :  { %1945 = vmatpush3.bf16.msra.mxu0 %v2353_v7 }
  0x3b   :  { %1946 = vmatprep.subr.bf16.mxu0 %v2272_v0 }
  0x3e   :  { %1948 = vmatpush3.bf16.msra.mxu0 %v2365_v10 }
  0x3f   :  { %1949 = vmatprep.subr.bf16.mxu0 %v2272_v0 }
  0x42   :  { %1951 = vmatpush3.bf16.msra.mxu0 %v2377_v13 }
  0x43   :  { %1952 = vmatprep.subr.bf16.mxu0 %v2272_v0 }
  0x46   :  { %1954 = vmatpush3.bf16.msra.mxu0 %v2389_v16 }
  0x47   :  { %1955 = vmatprep.subr.bf16.mxu0 %v2272_v0 }
  0x4a   :  { %1957 = vmatpush3.bf16.msra.mxu0 %v2401_v19 }
  0x4b   :  { %1958 = vmatprep.subr.bf16.mxu0 %v2272_v0 }
  0x4e   :  { %1960 = vmatpush3.bf16.msra.mxu0 %v2413_v22 }
  0x4f   :  { %1961 = vmatprep.subr.bf16.mxu0 %v2272_v0 }
  0x52   :  { %1963 = vmatpush3.bf16.msra.mxu0 %v2425_v25 }
  0x53   :  { %1988 = vmatprep.subr.bf16.mxu0 %v2272_v0 }
 0x108   :  { %v133_v28 = vpop.f32.mrb[0].mxu0 }
 0x109   :  { %v134_v29 = vadd.f32 %v2458_v27, %v133_v28  ;;  %v1611_v30 = vpop.f32.mrb[1].mxu0 }
 0x10b   :  { %v138_v31 = vmul.f32 0.5, %v134_v29 }
 0x10d   :  { %2149 = vtanh.f32 %v138_v31 }
 0x10e   :  { %2151 = vtanh.f32 %v134_v29 }
 0x117   :  { %v2150_v34 = vpop.eup %2149 }
 0x118   :  { %v140_v35 = vadd.f32 1.0, %v2150_v34  ;;  %v2152_v38 = vpop.eup %2151 }
 0x11a   :  { %v141_v37 = vmul.f32 0.5, %v140_v35 }
 0x11c   :  { %v142_v39 = vsel %vm2466_vm3, %v2152_v38, %v141_v37 }
 0x11d   :  { %145 = vrot.lane.b32.xlu0 %v142_v39, %s2275_s2  ;;  %v143_v42 = vmul.f32 0.0, %v142_v39 }
 0x18f   :  { %v146_v40 = vpop.permute.xlu0 %145 }
 0x190   :  { %v148_v41 = vmul.f32 %v146_v40, %v142_v39  ;;  %v1410_v40 = vld [vmem:[%s2855_s0 + $0x18] sm:$0xff] }
 0x192   :  { %150 = vrot.lane.b32.xlu0 %v148_v41, %s2276_s21 }
 0x204   :  { %v151_v43 = vpop.permute.xlu0 %150 }
 0x205   :  { %v153_v44 = vadd.f32 %v151_v43, %v143_v42 }
 0x207   :  { %2153 = vtanh.f32 %v153_v44 }
 0x211   :  { %v2154_v45 = vpop.eup %2153 }
 0x212   :  { %156 = vrot.lane.b32.xlu1 %v2154_v45, %s2275_s2 }
 0x284   :  { %v157_v46 = vpop.permute.xlu1 %156 }
 0x285   :  { %v159_v47 = vmul.f32 %v157_v46, %v142_v39 }
 0x287   :  { %161 = vrot.lane.b32.xlu1 %v159_v47, %s2276_s21 }
 0x2f9   :  { %v162_v49 = vpop.permute.xlu1 %161 }
 0x2fa   :  { %v165_v50 = vsel %vm164_vm4, %v162_v49, 0.0 }
 0x2fb   :  { %v168_v51 = vadd.f32 %v1408_v48, %v165_v50 }
 0x2fd   :  { %1645 = vmatmul.mubr.f32.vlgmr.msra.gmra.mrb[0].mxu1 %v168_v51 }
 0x2fe   :  { %1966 = vmatpush3.bf16.msra.mxu1 %v2347_v5  ;;  %1714 = vmatprep.mubr.msk.f32.mxu1 %vm2273_vm0, %v2274_v1 }
 0x2ff   :  { %1967 = vmatprep.subr.bf16.mxu1 %v2272_v0 }
 0x302   :  { %1969 = vmatpush3.bf16.msra.mxu1 %v2353_v7 }
 0x303   :  { %1970 = vmatprep.subr.bf16.mxu1 %v2272_v0 }
 0x306   :  { %1972 = vmatpush3.bf16.msra.mxu1 %v2365_v10 }
 0x307   :  { %1973 = vmatprep.subr.bf16.mxu1 %v2272_v0 }
 0x30a   :  { %1975 = vmatpush3.bf16.msra.mxu1 %v2377_v13 }
 0x30b   :  { %1976 = vmatprep.subr.bf16.mxu1 %v2272_v0 }
 0x30e   :  { %1978 = vmatpush3.bf16.msra.mxu1 %v2389_v16 }
 0x30f   :  { %1979 = vmatprep.subr.bf16.mxu1 %v2272_v0 }
 0x312   :  { %1981 = vmatpush3.bf16.msra.mxu1 %v2401_v19 }
 0x313   :  { %1982 = vmatprep.subr.bf16.mxu1 %v2272_v0 }
 0x316   :  { %1984 = vmatpush3.bf16.msra.mxu1 %v2413_v22 }
 0x317   :  { %1985 = vmatprep.subr.bf16.mxu1 %v2272_v0 }
 0x31a   :  { %1987 = vmatpush3.bf16.msra.mxu1 %v2425_v25 }
 0x31b   :  { %2012 = vmatprep.subr.bf16.mxu1 %v2272_v0 }
 0x3d0   :  { %v235_v52 = vpop.f32.mrb[0].mxu1 }
 0x3d1   :  { %v236_v53 = vadd.f32 %v2458_v27, %v235_v52  ;;  %v1646_v54 = vpop.f32.mrb[1].mxu1 }
 0x3d3   :  { %v240_v55 = vmul.f32 0.5, %v236_v53 }
 0x3d5   :  { %2155 = vtanh.f32 %v240_v55 }
 0x3d6   :  { %2157 = vtanh.f32 %v236_v53 }
 0x3df   :  { %v2156_v56 = vpop.eup %2155 }
 0x3e0   :  { %v242_v57 = vadd.f32 1.0, %v2156_v56  ;;  %v2158_v59 = vpop.eup %2157 }
 0x3e2   :  { %v243_v58 = vmul.f32 0.5, %v242_v57 }
 0x3e4   :  { %v244_v60 = vsel %vm2466_vm3, %v2158_v59, %v243_v58 }
 0x3e5   :  { %247 = vrot.lane.b32.xlu0 %v244_v60, %s2275_s2  ;;  %v245_v63 = vmul.f32 %v244_v60, %v153_v44 }
 0x457   :  { %v248_v61 = vpop.permute.xlu0 %247 }
 0x458   :  { %v250_v62 = vmul.f32 %v248_v61, %v244_v60  ;;  %v1411_v61 = vld [vmem:[%s2855_s0 + $0x20] sm:$0xff] }
 0x45a   :  { %252 = vrot.lane.b32.xlu1 %v250_v62, %s2276_s21 }
 0x4cc   :  { %v253_v2 = vpop.permute.xlu1 %252 }
 0x4cd   :  { %v255_v3 = vadd.f32 %v253_v2, %v245_v63 }
 0x4cf   :  { %2159 = vtanh.f32 %v255_v3 }
 0x4d9   :  { %v2160_v4 = vpop.eup %2159 }
 0x4da   :  { %258 = vrot.lane.b32.xlu0 %v2160_v4, %s2275_s2 }
 0x54c   :  { %v259_v6 = vpop.permute.xlu0 %258 }
 0x54d   :  { %v261_v8 = vmul.f32 %v259_v6, %v244_v60 }
 0x54f   :  { %263 = vrot.lane.b32.xlu1 %v261_v8, %s2276_s21 }
 0x5c1   :  { %v264_v11 = vpop.permute.xlu1 %263 }
 0x5c2   :  { %v266_v12 = vsel %vm164_vm4, %v264_v11, 0.0 }
 0x5c3   :  { %v269_v14 = vadd.f32 %v1409_v9, %v266_v12 }
 0x5c5   :  { %1680 = vmatmul.mubr.f32.vlgmr.msra.gmra.mrb[2].mxu0 %v269_v14 }
 0x5c6   :  { %1990 = vmatpush3.bf16.msra.mxu0 %v2347_v5  ;;  %1749 = vmatprep.mubr.msk.f32.mxu0 %vm2273_vm0, %v2274_v1 }
 0x5c7   :  { %1991 = vmatprep.subr.bf16.mxu0 %v2272_v0 }
 0x5ca   :  { %1993 = vmatpush3.bf16.msra.mxu0 %v2353_v7 }
 0x5cb   :  { %1994 = vmatprep.subr.bf16.mxu0 %v2272_v0 }
 0x5ce   :  { %1996 = vmatpush3.bf16.msra.mxu0 %v2365_v10 }
 0x5cf   :  { %1997 = vmatprep.subr.bf16.mxu0 %v2272_v0 }
 0x5d2   :  { %1999 = vmatpush3.bf16.msra.mxu0 %v2377_v13 }
 0x5d3   :  { %2000 = vmatprep.subr.bf16.mxu0 %v2272_v0 }
 0x5d6   :  { %2002 = vmatpush3.bf16.msra.mxu0 %v2389_v16 }
 0x5d7   :  { %2003 = vmatprep.subr.bf16.mxu0 %v2272_v0 }
 0x5da   :  { %2005 = vmatpush3.bf16.msra.mxu0 %v2401_v19 }
 0x5db   :  { %2006 = vmatprep.subr.bf16.mxu0 %v2272_v0 }
 0x5de   :  { %2008 = vmatpush3.bf16.msra.mxu0 %v2413_v22 }
 0x5df   :  { %2009 = vmatprep.subr.bf16.mxu0 %v2272_v0 }
 0x5e2   :  { %2011 = vmatpush3.bf16.msra.mxu0 %v2425_v25 }
 0x5e3   :  { %2036 = vmatprep.subr.bf16.mxu0 %v2272_v0 }
 0x698   :  { %v336_v15 = vpop.f32.mrb[2].mxu0 }
 0x699   :  { %v337_v17 = vadd.f32 %v2458_v27, %v336_v15  ;;  %v1681_v18 = vpop.f32.mrb[3].mxu0 }
 0x69b   :  { %v341_v20 = vmul.f32 0.5, %v337_v17 }
 0x69d   :  { %2161 = vtanh.f32 %v341_v20 }
 0x69e   :  { %2163 = vtanh.f32 %v337_v17 }
 0x6a7   :  { %v2162_v21 = vpop.eup %2161 }
 0x6a8   :  { %v343_v23 = vadd.f32 1.0, %v2162_v21  ;;  %v2164_v26 = vpop.eup %2163 }
 0x6aa   :  { %v344_v24 = vmul.f32 0.5, %v343_v23 }
 0x6ac   :  { %v345_v28 = vsel %vm2466_vm3, %v2164_v26, %v344_v24 }
 0x6ad   :  { %348 = vrot.lane.b32.xlu0 %v345_v28, %s2275_s2  ;;  %v346_v31 = vmul.f32 %v345_v28, %v255_v3 }
 0x71f   :  { %v349_v29 = vpop.permute.xlu0 %348 }
 0x720   :  { %v351_v30 = vmul.f32 %v349_v29, %v345_v28  ;;  %v1412_v29 = vld [vmem:[%s2855_s0 + $0x28] sm:$0xff] }
 0x722   :  { %353 = vrot.lane.b32.xlu1 %v351_v30, %s2276_s21 }
 0x794   :  { %v354_v34 = vpop.permute.xlu1 %353 }
 0x795   :  { %v356_v35 = vadd.f32 %v354_v34, %v346_v31 }
 0x797   :  { %2165 = vtanh.f32 %v356_v35 }
 0x7a1   :  { %v2166_v37 = vpop.eup %2165 }
 0x7a2   :  { %359 = vrot.lane.b32.xlu0 %v2166_v37, %s2275_s2 }
 0x814   :  { %v360_v38 = vpop.permute.xlu0 %359 }
 0x815   :  { %v362_v39 = vmul.f32 %v360_v38, %v345_v28 }
 0x817   :  { %364 = vrot.lane.b32.xlu1 %v362_v39, %s2276_s21 }
 0x889   :  { %v365_v41 = vpop.permute.xlu1 %364 }
 0x88a   :  { %v367_v42 = vsel %vm164_vm4, %v365_v41, 0.0 }
 0x88b   :  { %v370_v43 = vadd.f32 %v1410_v40, %v367_v42 }
 0x88d   :  { %1715 = vmatmul.mubr.f32.vlgmr.msra.gmra.mrb[2].mxu1 %v370_v43 }
 0x88e   :  { %2014 = vmatpush3.bf16.msra.mxu1 %v2347_v5  ;;  %1784 = vmatprep.mubr.msk.f32.mxu1 %vm2273_vm0, %v2274_v1 }
 0x88f   :  { %2015 = vmatprep.subr.bf16.mxu1 %v2272_v0 }
 0x892   :  { %2017 = vmatpush3.bf16.msra.mxu1 %v2353_v7 }
 0x893   :  { %2018 = vmatprep.subr.bf16.mxu1 %v2272_v0 }
 0x896   :  { %2020 = vmatpush3.bf16.msra.mxu1 %v2365_v10 }
 0x897   :  { %2021 = vmatprep.subr.bf16.mxu1 %v2272_v0 }
 0x89a   :  { %2023 = vmatpush3.bf16.msra.mxu1 %v2377_v13 }
 0x89b   :  { %2024 = vmatprep.subr.bf16.mxu1 %v2272_v0 }
 0x89e   :  { %2026 = vmatpush3.bf16.msra.mxu1 %v2389_v16 }
 0x89f   :  { %2027 = vmatprep.subr.bf16.mxu1 %v2272_v0 }
 0x8a2   :  { %2029 = vmatpush3.bf16.msra.mxu1 %v2401_v19 }
 0x8a3   :  { %2030 = vmatprep.subr.bf16.mxu1 %v2272_v0 }
 0x8a6   :  { %2032 = vmatpush3.bf16.msra.mxu1 %v2413_v22 }
 0x8a7   :  { %2033 = vmatprep.subr.bf16.mxu1 %v2272_v0 }
 0x8aa   :  { %2035 = vmatpush3.bf16.msra.mxu1 %v2425_v25 }
 0x8ab   :  { %2060 = vmatprep.subr.bf16.mxu1 %v2272_v0 }
 0x960   :  { %v437_v44 = vpop.f32.mrb[2].mxu1 }
 0x961   :  { %v438_v45 = vadd.f32 %v2458_v27, %v437_v44  ;;  %v1716_v46 = vpop.f32.mrb[3].mxu1 }
 0x963   :  { %v442_v47 = vmul.f32 0.5, %v438_v45 }
 0x965   :  { %2167 = vtanh.f32 %v442_v47 }
 0x966   :  { %2169 = vtanh.f32 %v438_v45  ;;  %v1413_v45 = vld [vmem:[%s2855_s0 + $0x30] sm:$0xff] }
 0x96f   :  { %v2168_v48 = vpop.eup %2167 }
 0x970   :  { %v444_v49 = vadd.f32 1.0, %v2168_v48  ;;  %v2170_v51 = vpop.eup %2169 }
 0x972   :  { %v445_v50 = vmul.f32 0.5, %v444_v49 }
 0x974   :  { %v446_v52 = vsel %vm2466_vm3, %v2170_v51, %v445_v50 }
 0x975   :  { %449 = vrot.lane.b32.xlu0 %v446_v52, %s2275_s2  ;;  %v447_v55 = vmul.f32 %v446_v52, %v356_v35 }
 0x9e7   :  { %v450_v53 = vpop.permute.xlu0 %449 }
 0x9e8   :  { %v452_v54 = vmul.f32 %v450_v53, %v446_v52 }
 0x9ea   :  { %454 = vrot.lane.b32.xlu1 %v452_v54, %s2276_s21 }
 0xa5c   :  { %v455_v56 = vpop.permute.xlu1 %454 }
 0xa5d   :  { %v457_v57 = vadd.f32 %v455_v56, %v447_v55 }
 0xa5f   :  { %2171 = vtanh.f32 %v457_v57 }
 0xa69   :  { %v2172_v58 = vpop.eup %2171 }
 0xa6a   :  { %460 = vrot.lane.b32.xlu0 %v2172_v58, %s2275_s2 }
 0xadc   :  { %v461_v59 = vpop.permute.xlu0 %460 }
 0xadd   :  { %v463_v60 = vmul.f32 %v461_v59, %v446_v52 }
 0xadf   :  { %465 = vrot.lane.b32.xlu1 %v463_v60, %s2276_s21 }
 0xb51   :  { %v466_v62 = vpop.permute.xlu1 %465 }
 0xb52   :  { %v468_v63 = vsel %vm164_vm4, %v466_v62, 0.0 }
 0xb53   :  { %v471_v2 = vadd.f32 %v1411_v61, %v468_v63 }
 0xb55   :  { %1750 = vmatmul.mubr.f32.vlgmr.msra.gmra.mrb[4].mxu0 %v471_v2 }
 0xb56   :  { %2038 = vmatpush3.bf16.msra.mxu0 %v2347_v5  ;;  %1819 = vmatprep.mubr.msk.f32.mxu0 %vm2273_vm0, %v2274_v1 }
 0xb57   :  { %2039 = vmatprep.subr.bf16.mxu0 %v2272_v0 }
 0xb5a   :  { %2041 = vmatpush3.bf16.msra.mxu0 %v2353_v7 }
 0xb5b   :  { %2042 = vmatprep.subr.bf16.mxu0 %v2272_v0 }
 0xb5e   :  { %2044 = vmatpush3.bf16.msra.mxu0 %v2365_v10 }
 0xb5f   :  { %2045 = vmatprep.subr.bf16.mxu0 %v2272_v0 }
 0xb62   :  { %2047 = vmatpush3.bf16.msra.mxu0 %v2377_v13 }
 0xb63   :  { %2048 = vmatprep.subr.bf16.mxu0 %v2272_v0 }
 0xb66   :  { %2050 = vmatpush3.bf16.msra.mxu0 %v2389_v16 }
 0xb67   :  { %2051 = vmatprep.subr.bf16.mxu0 %v2272_v0 }
 0xb6a   :  { %2053 = vmatpush3.bf16.msra.mxu0 %v2401_v19 }
 0xb6b   :  { %2054 = vmatprep.subr.bf16.mxu0 %v2272_v0 }
 0xb6e   :  { %2056 = vmatpush3.bf16.msra.mxu0 %v2413_v22 }
 0xb6f   :  { %2057 = vmatprep.subr.bf16.mxu0 %v2272_v0 }
 0xb72   :  { %2059 = vmatpush3.bf16.msra.mxu0 %v2425_v25 }
 0xb73   :  { %2084 = vmatprep.subr.bf16.mxu0 %v2272_v0 }
 0xc28   :  { %v538_v3 = vpop.f32.mrb[4].mxu0 }
 0xc29   :  { %v539_v4 = vadd.f32 %v2458_v27, %v538_v3  ;;  %v1751_v6 = vpop.f32.mrb[5].mxu0  ;;  %v1414_v3 = vld [vmem:[%s2855_s0 + $0x38] sm:$0xff] }
 0xc2b   :  { %v543_v8 = vmul.f32 0.5, %v539_v4 }
 0xc2d   :  { %2173 = vtanh.f32 %v543_v8 }
 0xc2e   :  { %2175 = vtanh.f32 %v539_v4 }
 0xc37   :  { %v2174_v9 = vpop.eup %2173 }
 0xc38   :  { %v545_v11 = vadd.f32 1.0, %v2174_v9  ;;  %v2176_v14 = vpop.eup %2175 }
 0xc3a   :  { %v546_v12 = vmul.f32 0.5, %v545_v11 }
 0xc3c   :  { %v547_v15 = vsel %vm2466_vm3, %v2176_v14, %v546_v12 }
 0xc3d   :  { %550 = vrot.lane.b32.xlu0 %v547_v15, %s2275_s2  ;;  %v548_v20 = vmul.f32 %v547_v15, %v457_v57 }
 0xcaf   :  { %v551_v17 = vpop.permute.xlu0 %550 }
 0xcb0   :  { %v553_v18 = vmul.f32 %v551_v17, %v547_v15 }
 0xcb2   :  { %555 = vrot.lane.b32.xlu1 %v553_v18, %s2276_s21 }
 0xd24   :  { %v556_v21 = vpop.permute.xlu1 %555 }
 0xd25   :  { %v558_v23 = vadd.f32 %v556_v21, %v548_v20 }
 0xd27   :  { %2177 = vtanh.f32 %v558_v23 }
 0xd31   :  { %v2178_v24 = vpop.eup %2177 }
 0xd32   :  { %561 = vrot.lane.b32.xlu0 %v2178_v24, %s2275_s2 }
 0xda4   :  { %v562_v26 = vpop.permute.xlu0 %561 }
 0xda5   :  { %v564_v28 = vmul.f32 %v562_v26, %v547_v15 }
 0xda7   :  { %566 = vrot.lane.b32.xlu1 %v564_v28, %s2276_s21 }
 0xe19   :  { %v567_v30 = vpop.permute.xlu1 %566 }
 0xe1a   :  { %v569_v31 = vsel %vm164_vm4, %v567_v30, 0.0  ;;  %v874_v30 = vld [vmem:[#allocation2 + $0x8] sm:$0xff] }
 0xe1b   :  { %v572_v34 = vadd.f32 %v1412_v29, %v569_v31  ;;  %v873_v29 = vld [vmem:[#allocation2] sm:$0xff]  ;;  %v875_v31 = vld [vmem:[#allocation2 + $0x10] sm:$0xff] }
 0xe1d   :  { %1785 = vmatmul.mubr.f32.vlgmr.msra.gmra.mrb[4].mxu1 %v572_v34  ;;  %v2085_v34 = vpack.c.bf16 %v874_v30, %v873_v29 }
 0xe1e   :  { %2062 = vmatpush3.bf16.msra.mxu1 %v2347_v5  ;;  %1854 = vmatprep.mubr.msk.f32.mxu1 %vm2273_vm0, %v2274_v1 }
 0xe1f   :  { %2063 = vmatprep.subr.bf16.mxu1 %v2272_v0 }
 0xe22   :  { %2065 = vmatpush3.bf16.msra.mxu1 %v2353_v7 }
 0xe23   :  { %2066 = vmatprep.subr.bf16.mxu1 %v2272_v0 }
 0xe26   :  { %2068 = vmatpush3.bf16.msra.mxu1 %v2365_v10 }
 0xe27   :  { %2069 = vmatprep.subr.bf16.mxu1 %v2272_v0 }
 0xe2a   :  { %2071 = vmatpush3.bf16.msra.mxu1 %v2377_v13 }
 0xe2b   :  { %2072 = vmatprep.subr.bf16.mxu1 %v2272_v0 }
 0xe2e   :  { %2074 = vmatpush3.bf16.msra.mxu1 %v2389_v16 }
 0xe2f   :  { %2075 = vmatprep.subr.bf16.mxu1 %v2272_v0 }
 0xe32   :  { %2077 = vmatpush3.bf16.msra.mxu1 %v2401_v19 }
 0xe33   :  { %2078 = vmatprep.subr.bf16.mxu1 %v2272_v0 }
 0xe36   :  { %2080 = vmatpush3.bf16.msra.mxu1 %v2413_v22 }
 0xe37   :  { %2081 = vmatprep.subr.bf16.mxu1 %v2272_v0 }
 0xe3a   :  { %2083 = vmatpush3.bf16.msra.mxu1 %v2425_v25 }
 0xef0   :  { %v639_v5 = vpop.f32.mrb[4].mxu1 }
 0xef1   :  { %v640_v7 = vadd.f32 %v2458_v27, %v639_v5  ;;  %v1786_v10 = vpop.f32.mrb[5].mxu1  ;;  %v876_v5 = vld [vmem:[#allocation2 + $0x18] sm:$0xff] }
 0xef2   :  { %v878_v10 = vld [vmem:[#allocation2 + $0x28] sm:$0xff] }
 0xef3   :  { %v644_v13 = vmul.f32 0.5, %v640_v7 }
 0xef5   :  { %2179 = vtanh.f32 %v644_v13  ;;  %v2091_v13 = vpack.c.bf16 %v878_v10, %v877_v36 }
 0xef6   :  { %2181 = vtanh.f32 %v640_v7  ;;  %v2088_v7 = vpack.c.bf16 %v876_v5, %v875_v31  ;;  %v2282_v5 = vmov 15  }
 0xeff   :  { %v2180_v16 = vpop.eup %2179 }
 0xf00   :  { %v646_v35 = vadd.f32 1.0, %v2180_v16  ;;  %v2182_v38 = vpop.eup %2181  ;;  %v879_v16 = vld [vmem:[#allocation2 + $0x30] sm:$0xff] }
 0xf02   :  { %v647_v37 = vmul.f32 0.5, %v646_v35  ;;  %v880_v35 = vld [vmem:[#allocation2 + $0x38] sm:$0xff] }
 0xf04   :  { %v648_v19 = vsel %vm2466_vm3, %v2182_v38, %v647_v37  ;;  %v2094_v38 = vpack.c.bf16 %v880_v35, %v879_v16 }
 0xf05   :  { %651 = vrot.lane.b32.xlu0 %v648_v19, %s2275_s2  ;;  %v649_v25 = vmul.f32 %v648_v19, %v558_v23 }
 0xf77   :  { %v652_v22 = vpop.permute.xlu0 %651 }
 0xf78   :  { %v654_v39 = vmul.f32 %v652_v22, %v648_v19  ;;  %v882_v22 = vld [vmem:[#allocation2 + $0x48] sm:$0xff] }
 0xf7a   :  { %656 = vrot.lane.b32.xlu1 %v654_v39, %s2276_s21 }
 0xfec   :  { %v657_v40 = vpop.permute.xlu1 %656 }
 0xfed   :  { %v659_v41 = vadd.f32 %v657_v40, %v649_v25  ;;  %v883_v25 = vld [vmem:[#allocation2 + $0x50] sm:$0xff]  ;;  %v884_v40 = vld [vmem:[#allocation2 + $0x58] sm:$0xff] }
 0xfef   :  { %2183 = vtanh.f32 %v659_v41 }
 0xff9   :  { %v2184_v42 = vpop.eup %2183 }
 0xffa   :  { %662 = vrot.lane.b32.xlu0 %v2184_v42, %s2275_s2  ;;  %v885_v42 = vld [vmem:[#allocation2 + $0x60] sm:$0xff] }
0x106c   :  { %v663_v43 = vpop.permute.xlu0 %662 }
0x106d   :  { %v665_v44 = vmul.f32 %v663_v43, %v648_v19  ;;  %v881_v19 = vld [vmem:[#allocation2 + $0x40] sm:$0xff]  ;;  %v886_v43 = vld [vmem:[#allocation2 + $0x68] sm:$0xff] }
0x106e   :  { %v2097_v39 = vpack.c.bf16 %v882_v22, %v881_v19 }
0x106f   :  { %667 = vrot.lane.b32.xlu1 %v665_v44, %s2276_s21  ;;  %v2103_v44 = vpack.c.bf16 %v886_v43, %v885_v42 }
0x10e1   :  { %v668_v46 = vpop.permute.xlu1 %667 }
0x10e2   :  { %v670_v47 = vsel %vm164_vm4, %v668_v46, 0.0  ;;  %v888_v46 = vld [vmem:[#allocation2 + $0x78] sm:$0xff] }
0x10e3   :  { %v673_v48 = vadd.f32 %v1413_v45, %v670_v47  ;;  %v887_v45 = vld [vmem:[#allocation2 + $0x70] sm:$0xff] }
0x10e4   :  { %v2106_v47 = vpack.c.bf16 %v888_v46, %v887_v45 }
0x10e5   :  { %1820 = vmatmul.mubr.f32.vlgmr.msra.gmra.mrb[6].mxu0 %v673_v48 }
0x10e6   :  { %1889 = vmatprep.mubr.msk.f32.mxu0 %vm2273_vm0, %v2274_v1  ;;  %2086 = vmatpush3.bf16.msra.mxu0 %v2085_v34  ;;  %v2281_v34 = vmov 14  }
0x10e7   :  { %2087 = vmatprep.subr.bf16.mxu0 %v2272_v0 }
0x10ea   :  { %2089 = vmatpush3.bf16.msra.mxu0 %v2088_v7 }
0x10eb   :  { %2090 = vmatprep.subr.bf16.mxu0 %v2272_v0 }
0x10ee   :  { %2092 = vmatpush3.bf16.msra.mxu0 %v2091_v13 }
0x10ef   :  { %2093 = vmatprep.subr.bf16.mxu0 %v2272_v0 }
0x10f2   :  { %2095 = vmatpush3.bf16.msra.mxu0 %v2094_v38 }
0x10f3   :  { %2096 = vmatprep.subr.bf16.mxu0 %v2272_v0 }
0x10f6   :  { %2098 = vmatpush3.bf16.msra.mxu0 %v2097_v39 }
0x10f7   :  { %2099 = vmatprep.subr.bf16.mxu0 %v2272_v0 }
0x11b8   :  { %v740_v49 = vpop.f32.mrb[6].mxu0 }
0x11b9   :  { %v741_v50 = vadd.f32 %v2458_v27, %v740_v49  ;;  %v1821_v51 = vpop.f32.mrb[7].mxu0 }
0x11ba   :  { %v971_v51 = vshrl.u32 %v37_v32, 7 }
0x11bb   :  { %v745_v52 = vmul.f32 0.5, %v741_v50 }
0x11bd   :  { %2185 = vtanh.f32 %v745_v52  ;;  %v972_v52 = vsub.s32 0, %v971_v51 }
0x11be   :  { %2187 = vtanh.f32 %v741_v50 }
0x11c7   :  { %v2186_v53 = vpop.eup %2185 }
0x11c8   :  { %v747_v54 = vadd.f32 1.0, %v2186_v53  ;;  %v2188_v56 = vpop.eup %2187  ;;  %v966_v53 = vld [vmem:[%s2859_s4] sm:$0xff]  ;;  %s2277_s4 = smov 120  }
0x11ca   :  { %v748_v55 = vmul.f32 0.5, %v747_v54  ;;  %v978_v54 = vsub.s32 1, %v971_v51 }
0x11cc   :  { %v749_v57 = vsel %vm2466_vm3, %v2188_v56, %v748_v55  ;;  %v2656_v55 = vrot.slane %v966_v53, %v972_v52  ;;  %v984_v56 = vsub.s32 2, %v971_v51 }
0x11cd   :  { %752 = vrot.lane.b32.xlu0 %v749_v57, %s2275_s2  ;;  %v750_v1 = vmul.f32 %v749_v57, %v659_v41  ;;  %v2100_v41 = vpack.c.bf16 %v884_v40, %v883_v25 }
0x11ce   :  { %v974_v32 = vmul.f32 0.0, %v2656_v55 }
0x11cf   :  { %2101 = vmatpush3.bf16.msra.mxu0 %v2100_v41 }
0x11d0   :  { %2102 = vmatprep.subr.bf16.mxu0 %v2272_v0 }
0x11d3   :  { %2104 = vmatpush3.bf16.msra.mxu0 %v2103_v44 }
0x11d4   :  { %2105 = vmatprep.subr.bf16.mxu0 %v2272_v0  ;;  %v2658_v0 = vrot.slane %v966_v53, %v978_v54 }
0x11d7   :  { %2107 = vmatpush3.bf16.msra.mxu0 %v2106_v47 }
0x123f   :  { %v753_v58 = vpop.permute.xlu0 %752 }
0x1240   :  { %v755_v59 = vmul.f32 %v753_v58, %v749_v57  ;;  %v1415_v58 = vld [vmem:[%s2860_s5] ss:$0 sm:$0xff]  ;;  %s2278_s5 = smov 4  }
0x1242   :  { %757 = vrot.lane.b32.xlu1 %v755_v59, %s2276_s21  ;;  %v2663_v59 = vrot.slane %v966_v53, %v984_v56 }
0x12b4   :  { %v758_v60 = vpop.permute.xlu1 %757 }
0x12b5   :  { %v760_v61 = vadd.f32 %v758_v60, %v750_v1 }
0x12b7   :  { %2189 = vtanh.f32 %v760_v61 }
0x12c1   :  { %v2190_v62 = vpop.eup %2189 }
0x12c2   :  { %763 = vrot.lane.b32.xlu0 %v2190_v62, %s2275_s2 }
0x1334   :  { %v764_v63 = vpop.permute.xlu0 %763 }
0x1335   :  { %v766_v2 = vmul.f32 %v764_v63, %v749_v57  ;;  %v990_v57 = vsub.s32 3, %v971_v51  ;;  %v980_v63 = vmul.f32 0.0, %v2658_v0 }
0x1337   :  { %768 = vrot.lane.b32.xlu1 %v766_v2, %s2276_s21  ;;  %v2666_v60 = vrot.slane %v966_v53, %v990_v57 }
0x13a9   :  { %v769_v4 = vpop.permute.xlu1 %768 }
0x13aa   :  { %v771_v6 = vsel %vm164_vm4, %v769_v4, 0.0 }
0x13ab   :  { %v774_v8 = vadd.f32 %v1414_v3, %v771_v6  ;;  %v986_v3 = vmul.f32 0.0, %v2663_v59  ;;  %v992_v6 = vmul.f32 0.0, %v2666_v60 }
0x13ad   :  { %1855 = vmatmul.mubr.f32.vlgmr.msra.gmra.mrb[6].mxu1 %v774_v8 }
0x1480   :  { %v841_v9 = vpop.f32.mrb[6].mxu1 }
0x1481   :  { %v842_v11 = vadd.f32 %v2458_v27, %v841_v9  ;;  %v1856_v12 = vpop.f32.mrb[7].mxu1 }
0x1483   :  { %v846_v14 = vmul.f32 0.5, %v842_v11 }
0x1485   :  { %2191 = vtanh.f32 %v846_v14 }
0x1486   :  { %2193 = vtanh.f32 %v842_v11 }
0x148f   :  { %v2192_v15 = vpop.eup %2191 }
0x1490   :  { %v848_v17 = vadd.f32 1.0, %v2192_v15  ;;  %v2194_v20 = vpop.eup %2193 }
0x1492   :  { %v849_v18 = vmul.f32 0.5, %v848_v17 }
0x1494   :  { %v850_v21 = vsel %vm2466_vm3, %v2194_v20, %v849_v18 }
0x1495   :  { %853 = vrot.lane.b32.xlu0 %v850_v21, %s2275_s2  ;;  %v851_v26 = vmul.f32 %v850_v21, %v760_v61 }
0x1507   :  { %v854_v23 = vpop.permute.xlu0 %853 }
0x1508   :  { %v856_v24 = vmul.f32 %v854_v23, %v850_v21 }
0x150a   :  { %858 = vrot.lane.b32.xlu1 %v856_v24, %s2276_s21 }
0x157c   :  { %v859_v28 = vpop.permute.xlu1 %858 }
0x157d   :  { %v861_v27 = vadd.f32 %v859_v28, %v851_v26  ;;  %v2279_v28 = vmov 13  }
0x157e   :  { %2124 = vset.pattern.permute.xlu0 %v2279_v28 }
0x157f   :  { %2195 = vtanh.f32 %v861_v27  ;;  %v2280_v27 = vmov 12  }
0x1580   :  { %2123 = vset.pattern.permute.xlu1 %v2280_v27 }
0x1589   :  { %v2196_v37 = vpop.eup %2195 }
0x158a   :  { %864 = vrot.lane.b32.xlu0 %v2196_v37, %s2275_s2 }
0x15fc   :  { %v865_v48 = vpop.permute.xlu0 %864 }
0x15fd   :  { %v867_v49 = vmul.f32 %v865_v48, %v850_v21 }
0x15ff   :  { %869 = vrot.lane.b32.xlu1 %v867_v49, %s2276_s21 }
0x1671   :  { %v870_v50 = vpop.permute.xlu1 %869 }
0x1672   :  { %1890 = vmatmul.mubr.msk.f32.vlgmr.msra.gmra.mrb[8].mxu0 %vm164_vm4, %v870_v50 }
0x1745   :  { %v962_v1 = vpop.f32.mrb[8].mxu0 }
0x1746   :  { %v2668_v61 = vadd.f32 %v1415_v58, %v962_v1  ;;  %v1891_v62 = vpop.f32.mrb[9].mxu0 }
0x1748   :  { %v975_v2 = vadd.f32 %v974_v32, %v2668_v61 }
0x174a   :  { %v981_v4 = vadd.f32 %v980_v63, %v975_v2 }
0x174c   :  { %v987_v8 = vadd.f32 %v986_v3, %v981_v4 }
0x174e   :  { %v993_v9 = vadd.f32 %v992_v6, %v987_v8 }
0x1750   :  { %v995_v11 = vmul.f32 0.5, %v993_v9 }
0x1752   :  { %2197 = vtanh.f32 %v995_v11 }
0x1753   :  { %2199 = vtanh.f32 %v993_v9 }
0x175c   :  { %v2198_v12 = vpop.eup %2197 }
0x175d   :  { %v997_v14 = vadd.f32 1.0, %v2198_v12  ;;  %v2200_v18 = vpop.eup %2199 }
0x175f   :  { %v998_v17 = vmul.f32 0.5, %v997_v14 }
0x1761   :  { %v999_v20 = vsel %vm2676_vm7, %v2200_v18, %v998_v17 }
0x1762   :  { %1002 = vrot.lane.b32.xlu0 %v999_v20, %s2277_s4  ;;  %v1000_v33 = vmul.f32 0.0, %v999_v20 }
0x17d4   :  { %v1003_v21 = vpop.permute.xlu0 %1002 }
0x17d5   :  { %v1005_v23 = vmul.f32 %v1003_v21, %v999_v20 }
0x17d7   :  { %1007 = vrot.lane.b32.xlu1 %v1005_v23, %s2278_s5 }
0x1849   :  { %v1008_v24 = vpop.permute.xlu1 %1007 }
0x184a   :  { %v1010_v26 = vadd.f32 %v1008_v24, %v1000_v33 }
0x184c   :  { %2201 = vtanh.f32 %v1010_v26 }
0x1856   :  { %v2202_v29 = vpop.eup %2201 }
0x1857   :  { %1013 = vrot.lane.b32.xlu0 %v2202_v29, %s2271_s8 }
0x18c9   :  { %v1014_v30 = vpop.permute.xlu0 %1013 }
0x18ca   :  { %v2687_v31 = vmul.f32 %v1014_v30, %v999_v20 }
0x18cc   :  { %1031 = vperm.xlu0 %2124, %v2687_v31   ;;  %1025 = vperm.xlu1 %2123, %v2687_v31  }
0x18d0   :  { %2125 = vset.pattern.permute.xlu1 %v2281_v34 }
0x18d1   :  { %1037 = vperm.xlu1 %2125, %v2687_v31  }
0x18d5   :  { %2126 = vset.pattern.permute.xlu1 %v2282_v5 }
0x18d6   :  { %1043 = vperm.xlu1 %2126, %v2687_v31  }
0x18da   :  { %2127 = vset.pattern.permute.xlu1 %v2280_v27 }
0x194b   :  { %v1026_v7 = vpop.permute.xlu1 %1025  ;;  %v1032_v10 = vpop.permute.xlu0 %1031 }
0x194c   :  { %v1028_v36 = vmul.f32 %v1026_v7, %v2656_v55  ;;  %v1034_v16 = vmul.f32 %v1032_v10, %v2658_v0 }
0x194e   :  { %v1029_v13 = vadd.f32 %v1028_v36, %v2668_v61 }
0x1950   :  { %v1038_v35 = vpop.permute.xlu1 %1037  ;;  %v1035_v37 = vadd.f32 %v1034_v16, %v1029_v13 }
0x1951   :  { %v1040_v38 = vmul.f32 %v1038_v35, %v2663_v59 }
0x1953   :  { %v1041_v22 = vadd.f32 %v1040_v38, %v1035_v37 }
0x1955   :  { %v1044_v19 = vpop.permute.xlu1 %1043 }
0x1956   :  { %v1046_v39 = vmul.f32 %v1044_v19, %v2666_v60 }
0x1958   :  { %v1047_v25 = vadd.f32 %v1046_v39, %v1041_v22 }
0x195a   :  { %v1049_v40 = vmul.f32 0.5, %v1047_v25 }
0x195c   :  { %2203 = vtanh.f32 %v1049_v40 }
0x195d   :  { %2205 = vtanh.f32 %v1047_v25 }
0x1966   :  { %v2204_v41 = vpop.eup %2203 }
0x1967   :  { %v1051_v42 = vadd.f32 1.0, %v2204_v41  ;;  %v2206_v44 = vpop.eup %2205 }
0x1969   :  { %v1052_v43 = vmul.f32 0.5, %v1051_v42 }
0x196b   :  { %v1053_v45 = vsel %vm2676_vm7, %v2206_v44, %v1052_v43 }
0x196c   :  { %1056 = vrot.lane.b32.xlu0 %v1053_v45, %s2277_s4  ;;  %v1054_v48 = vmul.f32 %v1053_v45, %v1010_v26 }
0x19de   :  { %v1057_v46 = vpop.permute.xlu0 %1056 }
0x19df   :  { %v1059_v47 = vmul.f32 %v1057_v46, %v1053_v45 }
0x19e1   :  { %1061 = vrot.lane.b32.xlu1 %v1059_v47, %s2278_s5 }
0x1a53   :  { %v1062_v49 = vpop.permute.xlu1 %1061 }
0x1a54   :  { %v1064_v50 = vadd.f32 %v1062_v49, %v1054_v48 }
0x1a56   :  { %2207 = vtanh.f32 %v1064_v50 }
0x1a60   :  { %v2208_v51 = vpop.eup %2207 }
0x1a61   :  { %1067 = vrot.lane.b32.xlu0 %v2208_v51, %s2271_s8 }
0x1ad3   :  { %v1068_v52 = vpop.permute.xlu0 %1067 }
0x1ad4   :  { %v2706_v53 = vmul.f32 %v1068_v52, %v1053_v45 }
0x1ad6   :  { %1085 = vperm.xlu0 %2124, %v2706_v53   ;;  %1079 = vperm.xlu1 %2127, %v2706_v53  }
0x1ada   :  { %2129 = vset.pattern.permute.xlu0 %v2282_v5  ;;  %2128 = vset.pattern.permute.xlu1 %v2281_v34 }
0x1adb   :  { %1097 = vperm.xlu0 %2129, %v2706_v53   ;;  %1091 = vperm.xlu1 %2128, %v2706_v53  }
0x1adf   :  { %2131 = vset.pattern.permute.xlu0 %v2279_v28  ;;  %2130 = vset.pattern.permute.xlu1 %v2280_v27 }
0x1b55   :  { %v1086_v54 = vpop.permute.xlu0 %1085  ;;  %v1080_v56 = vpop.permute.xlu1 %1079 }
0x1b56   :  { %v1082_v57 = vmul.f32 %v1080_v56, %v2656_v55  ;;  %v1088_v58 = vmul.f32 %v1086_v54, %v2658_v0 }
0x1b58   :  { %v1083_v32 = vadd.f32 %v1082_v57, %v2668_v61 }
0x1b5a   :  { %v1098_v1 = vpop.permute.xlu0 %1097  ;;  %v1089_v62 = vadd.f32 %v1088_v58, %v1083_v32  ;;  %v1092_v63 = vpop.permute.xlu1 %1091 }
0x1b5b   :  { %v1094_v2 = vmul.f32 %v1092_v63, %v2663_v59  ;;  %v1100_v3 = vmul.f32 %v1098_v1, %v2666_v60 }
0x1b5d   :  { %v1095_v4 = vadd.f32 %v1094_v2, %v1089_v62 }
0x1b5f   :  { %v1101_v6 = vadd.f32 %v1100_v3, %v1095_v4 }
0x1b61   :  { %v1103_v8 = vmul.f32 0.5, %v1101_v6 }
0x1b63   :  { %2209 = vtanh.f32 %v1103_v8 }
0x1b64   :  { %2211 = vtanh.f32 %v1101_v6 }
0x1b6d   :  { %v2210_v9 = vpop.eup %2209 }
0x1b6e   :  { %v1105_v11 = vadd.f32 1.0, %v2210_v9  ;;  %v2212_v14 = vpop.eup %2211 }
0x1b70   :  { %v1106_v12 = vmul.f32 0.5, %v1105_v11 }
0x1b72   :  { %v1107_v17 = vsel %vm2676_vm7, %v2212_v14, %v1106_v12 }
0x1b73   :  { %1110 = vrot.lane.b32.xlu1 %v1107_v17, %s2277_s4  ;;  %v1108_v21 = vmul.f32 %v1107_v17, %v1064_v50 }
0x1be5   :  { %v1111_v18 = vpop.permute.xlu1 %1110 }
0x1be6   :  { %v1113_v20 = vmul.f32 %v1111_v18, %v1107_v17 }
0x1be8   :  { %1115 = vrot.lane.b32.xlu1 %v1113_v20, %s2278_s5 }
0x1c5a   :  { %v1116_v23 = vpop.permute.xlu1 %1115 }
0x1c5b   :  { %v1118_v33 = vadd.f32 %v1116_v23, %v1108_v21 }
0x1c5d   :  { %2213 = vtanh.f32 %v1118_v33 }
0x1c67   :  { %v2214_v24 = vpop.eup %2213 }
0x1c68   :  { %1121 = vrot.lane.b32.xlu0 %v2214_v24, %s2271_s8 }
0x1cda   :  { %v1122_v26 = vpop.permute.xlu0 %1121 }
0x1cdb   :  { %v2726_v29 = vmul.f32 %v1122_v26, %v1107_v17 }
0x1cdd   :  { %1139 = vperm.xlu0 %2131, %v2726_v29   ;;  %1133 = vperm.xlu1 %2130, %v2726_v29  }
0x1ce1   :  { %2132 = vset.pattern.permute.xlu1 %v2281_v34 }
0x1ce2   :  { %1145 = vperm.xlu1 %2132, %v2726_v29  }
0x1ce6   :  { %2133 = vset.pattern.permute.xlu1 %v2282_v5 }
0x1ce7   :  { %1151 = vperm.xlu1 %2133, %v2726_v29  }
0x1ceb   :  { %2134 = vset.pattern.permute.xlu1 %v2280_v27 }
0x1d5c   :  { %v1134_v30 = vpop.permute.xlu1 %1133  ;;  %v1140_v36 = vpop.permute.xlu0 %1139 }
0x1d5d   :  { %v1136_v7 = vmul.f32 %v1134_v30, %v2656_v55  ;;  %v1142_v13 = vmul.f32 %v1140_v36, %v2658_v0 }
0x1d5f   :  { %v1137_v10 = vadd.f32 %v1136_v7, %v2668_v61 }
0x1d61   :  { %v1146_v16 = vpop.permute.xlu1 %1145  ;;  %v1143_v35 = vadd.f32 %v1142_v13, %v1137_v10 }
0x1d62   :  { %v1148_v37 = vmul.f32 %v1146_v16, %v2663_v59 }
0x1d64   :  { %v1149_v19 = vadd.f32 %v1148_v37, %v1143_v35 }
0x1d66   :  { %v1152_v38 = vpop.permute.xlu1 %1151 }
0x1d67   :  { %v1154_v22 = vmul.f32 %v1152_v38, %v2666_v60 }
0x1d69   :  { %v1155_v39 = vadd.f32 %v1154_v22, %v1149_v19 }
0x1d6b   :  { %v1157_v25 = vmul.f32 0.5, %v1155_v39 }
0x1d6d   :  { %2215 = vtanh.f32 %v1157_v25 }
0x1d6e   :  { %2217 = vtanh.f32 %v1155_v39 }
0x1d77   :  { %v2216_v40 = vpop.eup %2215 }
0x1d78   :  { %v1159_v41 = vadd.f32 1.0, %v2216_v40  ;;  %v2218_v43 = vpop.eup %2217 }
0x1d7a   :  { %v1160_v42 = vmul.f32 0.5, %v1159_v41 }
0x1d7c   :  { %v1161_v44 = vsel %vm2676_vm7, %v2218_v43, %v1160_v42 }
0x1d7d   :  { %1164 = vrot.lane.b32.xlu0 %v1161_v44, %s2277_s4  ;;  %v1162_v47 = vmul.f32 %v1161_v44, %v1118_v33 }
0x1def   :  { %v1165_v45 = vpop.permute.xlu0 %1164 }
0x1df0   :  { %v1167_v46 = vmul.f32 %v1165_v45, %v1161_v44 }
0x1df2   :  { %1169 = vrot.lane.b32.xlu1 %v1167_v46, %s2278_s5 }
0x1e64   :  { %v1170_v48 = vpop.permute.xlu1 %1169 }
0x1e65   :  { %v1172_v49 = vadd.f32 %v1170_v48, %v1162_v47 }
0x1e67   :  { %2219 = vtanh.f32 %v1172_v49 }
0x1e71   :  { %v2220_v50 = vpop.eup %2219 }
0x1e72   :  { %1175 = vrot.lane.b32.xlu0 %v2220_v50, %s2271_s8 }
0x1ee4   :  { %v1176_v51 = vpop.permute.xlu0 %1175 }
0x1ee5   :  { %v2745_v52 = vmul.f32 %v1176_v51, %v1161_v44 }
0x1ee7   :  { %1193 = vperm.xlu0 %2131, %v2745_v52   ;;  %1187 = vperm.xlu1 %2134, %v2745_v52  }
0x1eeb   :  { %2136 = vset.pattern.permute.xlu0 %v2282_v5  ;;  %2135 = vset.pattern.permute.xlu1 %v2281_v34 }
0x1eec   :  { %1205 = vperm.xlu0 %2136, %v2745_v52   ;;  %1199 = vperm.xlu1 %2135, %v2745_v52  }
0x1ef0   :  { %2138 = vset.pattern.permute.xlu0 %v2279_v28  ;;  %2137 = vset.pattern.permute.xlu1 %v2280_v27 }
0x1f66   :  { %v1194_v54 = vpop.permute.xlu0 %1193  ;;  %v1188_v56 = vpop.permute.xlu1 %1187 }
0x1f67   :  { %v1190_v57 = vmul.f32 %v1188_v56, %v2656_v55  ;;  %v1196_v58 = vmul.f32 %v1194_v54, %v2658_v0 }
0x1f69   :  { %v1191_v32 = vadd.f32 %v1190_v57, %v2668_v61 }
0x1f6b   :  { %v1206_v1 = vpop.permute.xlu0 %1205  ;;  %v1197_v62 = vadd.f32 %v1196_v58, %v1191_v32  ;;  %v1200_v63 = vpop.permute.xlu1 %1199 }
0x1f6c   :  { %v1202_v2 = vmul.f32 %v1200_v63, %v2663_v59  ;;  %v1208_v3 = vmul.f32 %v1206_v1, %v2666_v60 }
0x1f6e   :  { %v1203_v4 = vadd.f32 %v1202_v2, %v1197_v62 }
0x1f70   :  { %v1209_v6 = vadd.f32 %v1208_v3, %v1203_v4 }
0x1f72   :  { %v1211_v8 = vmul.f32 0.5, %v1209_v6 }
0x1f74   :  { %2221 = vtanh.f32 %v1211_v8 }
0x1f75   :  { %2223 = vtanh.f32 %v1209_v6 }
0x1f7e   :  { %v2222_v9 = vpop.eup %2221 }
0x1f7f   :  { %v1213_v11 = vadd.f32 1.0, %v2222_v9  ;;  %v2224_v14 = vpop.eup %2223 }
0x1f81   :  { %v1214_v12 = vmul.f32 0.5, %v1213_v11 }
0x1f83   :  { %v1215_v17 = vsel %vm2676_vm7, %v2224_v14, %v1214_v12 }
0x1f84   :  { %1218 = vrot.lane.b32.xlu1 %v1215_v17, %s2277_s4  ;;  %v1216_v21 = vmul.f32 %v1215_v17, %v1172_v49 }
0x1ff6   :  { %v1219_v18 = vpop.permute.xlu1 %1218 }
0x1ff7   :  { %v1221_v20 = vmul.f32 %v1219_v18, %v1215_v17 }
0x1ff9   :  { %1223 = vrot.lane.b32.xlu1 %v1221_v20, %s2278_s5 }
0x206b   :  { %v1224_v23 = vpop.permute.xlu1 %1223 }
0x206c   :  { %v1226_v33 = vadd.f32 %v1224_v23, %v1216_v21 }
0x206e   :  { %2225 = vtanh.f32 %v1226_v33 }
0x2078   :  { %v2226_v24 = vpop.eup %2225 }
0x2079   :  { %1229 = vrot.lane.b32.xlu0 %v2226_v24, %s2271_s8 }
0x20eb   :  { %v1230_v26 = vpop.permute.xlu0 %1229 }
0x20ec   :  { %v2765_v30 = vmul.f32 %v1230_v26, %v1215_v17 }
0x20ee   :  { %1247 = vperm.xlu0 %2138, %v2765_v30   ;;  %1241 = vperm.xlu1 %2137, %v2765_v30  }
0x20f2   :  { %2139 = vset.pattern.permute.xlu1 %v2281_v34 }
0x20f3   :  { %1253 = vperm.xlu1 %2139, %v2765_v30  }
0x20f7   :  { %2140 = vset.pattern.permute.xlu1 %v2282_v5 }
0x20f8   :  { %1259 = vperm.xlu1 %2140, %v2765_v30  }
0x20fc   :  { %2141 = vset.pattern.permute.xlu1 %v2280_v27 }
0x216d   :  { %v1242_v7 = vpop.permute.xlu1 %1241  ;;  %v1248_v10 = vpop.permute.xlu0 %1247 }
0x216e   :  { %v1244_v36 = vmul.f32 %v1242_v7, %v2656_v55  ;;  %v1250_v16 = vmul.f32 %v1248_v10, %v2658_v0 }
0x2170   :  { %v1245_v13 = vadd.f32 %v1244_v36, %v2668_v61 }
0x2172   :  { %v1254_v35 = vpop.permute.xlu1 %1253  ;;  %v1251_v37 = vadd.f32 %v1250_v16, %v1245_v13 }
0x2173   :  { %v1256_v38 = vmul.f32 %v1254_v35, %v2663_v59 }
0x2175   :  { %v1257_v22 = vadd.f32 %v1256_v38, %v1251_v37 }
0x2177   :  { %v1260_v19 = vpop.permute.xlu1 %1259 }
0x2178   :  { %v1262_v39 = vmul.f32 %v1260_v19, %v2666_v60 }
0x217a   :  { %v1263_v25 = vadd.f32 %v1262_v39, %v1257_v22 }
0x217c   :  { %v1265_v40 = vmul.f32 0.5, %v1263_v25 }
0x217e   :  { %2227 = vtanh.f32 %v1265_v40 }
0x217f   :  { %2229 = vtanh.f32 %v1263_v25 }
0x2188   :  { %v2228_v41 = vpop.eup %2227 }
0x2189   :  { %v1267_v42 = vadd.f32 1.0, %v2228_v41  ;;  %v2230_v44 = vpop.eup %2229 }
0x218b   :  { %v1268_v43 = vmul.f32 0.5, %v1267_v42 }
0x218d   :  { %v1269_v45 = vsel %vm2676_vm7, %v2230_v44, %v1268_v43 }
0x218e   :  { %1272 = vrot.lane.b32.xlu0 %v1269_v45, %s2277_s4  ;;  %v1270_v48 = vmul.f32 %v1269_v45, %v1226_v33 }
0x2200   :  { %v1273_v46 = vpop.permute.xlu0 %1272 }
0x2201   :  { %v1275_v47 = vmul.f32 %v1273_v46, %v1269_v45 }
0x2203   :  { %1277 = vrot.lane.b32.xlu1 %v1275_v47, %s2278_s5 }
0x2275   :  { %v1278_v49 = vpop.permute.xlu1 %1277 }
0x2276   :  { %v1280_v50 = vadd.f32 %v1278_v49, %v1270_v48 }
0x2278   :  { %2231 = vtanh.f32 %v1280_v50 }
0x2282   :  { %v2232_v51 = vpop.eup %2231 }
0x2283   :  { %1283 = vrot.lane.b32.xlu0 %v2232_v51, %s2271_s8 }
0x22f5   :  { %v1284_v54 = vpop.permute.xlu0 %1283 }
0x22f6   :  { %v2784_v56 = vmul.f32 %v1284_v54, %v1269_v45 }
0x22f8   :  { %1301 = vperm.xlu0 %2138, %v2784_v56   ;;  %1295 = vperm.xlu1 %2141, %v2784_v56  }
0x22fc   :  { %2143 = vset.pattern.permute.xlu0 %v2282_v5  ;;  %2142 = vset.pattern.permute.xlu1 %v2281_v34 }
0x22fd   :  { %1313 = vperm.xlu0 %2143, %v2784_v56   ;;  %1307 = vperm.xlu1 %2142, %v2784_v56  }
0x2301   :  { %2145 = vset.pattern.permute.xlu0 %v2279_v28  ;;  %2144 = vset.pattern.permute.xlu1 %v2280_v27 }
0x2377   :  { %v1302_v57 = vpop.permute.xlu0 %1301  ;;  %v1296_v58 = vpop.permute.xlu1 %1295 }
0x2378   :  { %v1298_v32 = vmul.f32 %v1296_v58, %v2656_v55  ;;  %v1304_v1 = vmul.f32 %v1302_v57, %v2658_v0 }
0x237a   :  { %v1299_v62 = vadd.f32 %v1298_v32, %v2668_v61 }
0x237c   :  { %v1314_v63 = vpop.permute.xlu0 %1313  ;;  %v1305_v2 = vadd.f32 %v1304_v1, %v1299_v62  ;;  %v1308_v3 = vpop.permute.xlu1 %1307 }
0x237d   :  { %v1310_v4 = vmul.f32 %v1308_v3, %v2663_v59  ;;  %v1316_v6 = vmul.f32 %v1314_v63, %v2666_v60 }
0x237f   :  { %v1311_v8 = vadd.f32 %v1310_v4, %v1305_v2 }
0x2381   :  { %v1317_v9 = vadd.f32 %v1316_v6, %v1311_v8 }
0x2383   :  { %v1319_v28 = vmul.f32 0.5, %v1317_v9 }
0x2385   :  { %2233 = vtanh.f32 %v1319_v28 }
0x2386   :  { %2235 = vtanh.f32 %v1317_v9 }
0x238f   :  { %v2234_v27 = vpop.eup %2233 }
0x2390   :  { %v1321_v11 = vadd.f32 1.0, %v2234_v27  ;;  %v2236_v14 = vpop.eup %2235 }
0x2392   :  { %v1322_v12 = vmul.f32 0.5, %v1321_v11 }
0x2394   :  { %v1323_v17 = vsel %vm2676_vm7, %v2236_v14, %v1322_v12 }
0x2395   :  { %1326 = vrot.lane.b32.xlu1 %v1323_v17, %s2277_s4  ;;  %v1324_v21 = vmul.f32 %v1323_v17, %v1280_v50 }
0x2407   :  { %v1327_v18 = vpop.permute.xlu1 %1326 }
0x2408   :  { %v1329_v20 = vmul.f32 %v1327_v18, %v1323_v17 }
0x240a   :  { %1331 = vrot.lane.b32.xlu1 %v1329_v20, %s2278_s5 }
0x247c   :  { %v1332_v23 = vpop.permute.xlu1 %1331 }
0x247d   :  { %v1334_v33 = vadd.f32 %v1332_v23, %v1324_v21 }
0x247f   :  { %2237 = vtanh.f32 %v1334_v33 }
0x2489   :  { %v2238_v24 = vpop.eup %2237 }
0x248a   :  { %1337 = vrot.lane.b32.xlu0 %v2238_v24, %s2271_s8 }
0x24fc   :  { %v1338_v26 = vpop.permute.xlu0 %1337 }
0x24fd   :  { %v1340_v7 = vmul.f32 %v1338_v26, %v1323_v17 }
0x24ff   :  { %1355 = vperm.xlu0 %2145, %v1340_v7   ;;  %1349 = vperm.xlu1 %2144, %v1340_v7  }
0x2503   :  { %2146 = vset.pattern.permute.xlu1 %v2281_v34  ;;  %2148 = vset.pattern.permute.xlu0 %v2282_v5 }
0x2504   :  { %1361 = vperm.xlu1 %2146, %v1340_v7  }
0x2508   :  { %2147 = vset.pattern.permute.xlu1 %v2282_v5 }
0x2509   :  { %1367 = vperm.xlu1 %2147, %v1340_v7  }
0x257e   :  { %v1350_v36 = vpop.permute.xlu1 %1349  ;;  %v1356_v13 = vpop.permute.xlu0 %1355 }
0x257f   :  { %v1352_v10 = vmul.f32 %v1350_v36, %v2656_v55  ;;  %v1358_v35 = vmul.f32 %v1356_v13, %v2658_v0 }
0x2581   :  { %v1353_v16 = vadd.f32 %v1352_v10, %v2668_v61 }
0x2583   :  { %v1362_v37 = vpop.permute.xlu1 %1361  ;;  %v1359_v38 = vadd.f32 %v1358_v35, %v1353_v16 }
0x2584   :  { %v1364_v19 = vmul.f32 %v1362_v37, %v2663_v59 }
0x2586   :  { %v1365_v34 = vadd.f32 %v1364_v19, %v1359_v38 }
0x2588   :  { %v1368_v22 = vpop.permute.xlu1 %1367 }
0x2589   :  { %v1370_v39 = vmul.f32 %v1368_v22, %v2666_v60 }
0x258b   :  { %v1371_v25 = vadd.f32 %v1370_v39, %v1365_v34 }
0x258d   :  { %v1373_v40 = vmul.f32 0.5, %v1371_v25 }
0x258f   :  { %2239 = vtanh.f32 %v1373_v40 }
0x2590   :  { %2241 = vtanh.f32 %v1371_v25 }
0x2599   :  { %v2240_v5 = vpop.eup %2239 }
0x259a   :  { %v1375_v41 = vadd.f32 1.0, %v2240_v5  ;;  %v2242_v42 = vpop.eup %2241 }
0x259c   :  { %v1376_v55 = vmul.f32 0.5, %v1375_v41 }
0x259e   :  { %v1377_v61 = vsel %vm2676_vm7, %v2242_v42, %v1376_v55 }
0x259f   :  { %1380 = vrot.lane.b32.xlu0 %v1377_v61, %s2277_s4  ;;  %v1378_v59 = vmul.f32 %v1377_v61, %v1334_v33 }
0x2611   :  { %v1381_v0 = vpop.permute.xlu0 %1380 }
0x2612   :  { %v1383_v43 = vmul.f32 %v1381_v0, %v1377_v61 }
0x2614   :  { %1385 = vrot.lane.b32.xlu1 %v1383_v43, %s2278_s5 }
0x2618   :  { %1018 = vrot.lane.b32.xlu1 %v2687_v31, %s2283_s15 }
0x261c   :  { %1126 = vrot.lane.b32.xlu1 %v2726_v29, %s2283_s15 }
0x2620   :  { %1234 = vrot.lane.b32.xlu1 %v2765_v30, %s2283_s15 }
0x2624   :  { %1342 = vrot.lane.b32.xlu1 %v1340_v7, %s2283_s15 }
0x2686   :  { %v1386_v60 = vpop.permute.xlu1 %1385 }
0x2687   :  { %v1388_v44 = vadd.f32 %v1386_v60, %v1378_v59 }
0x2689   :  { %2243 = vtanh.f32 %v1388_v44 }
0x268a   :  { %v1019_v15 = vpop.permute.xlu1 %1018 }
0x268b   :  { %v1022_v45 = vsel %vm1021_vm8, %v1019_v15, 0.0 }
0x268c   :  { %1023 = vst [vmem:[%s2861_s6] sm:$0xff] %v1022_v45 }
0x268e   :  { %v1127_v46 = vpop.permute.xlu1 %1126 }
0x268f   :  { %v1129_v31 = vsel %vm1021_vm8, %v1127_v46, 0.0 }
0x2690   :  { %1418 = vst [vmem:[%s2861_s6 + $0x10] sm:$0xff] %v1129_v31 }
0x2692   :  { %v1235_v29 = vpop.permute.xlu1 %1234 }
0x2693   :  { %v2244_v30 = vpop.eup %2243  ;;  %v1237_v47 = vsel %vm1021_vm8, %v1235_v29, 0.0 }
0x2694   :  { %1420 = vst [vmem:[%s2861_s6 + $0x20] sm:$0xff] %v1237_v47  ;;  %1391 = vrot.lane.b32.xlu0 %v2244_v30, %s2271_s8 }
0x2696   :  { %v1343_v48 = vpop.permute.xlu1 %1342 }
0x2697   :  { %v1345_v49 = vsel %vm1021_vm8, %v1343_v48, 0.0 }
0x2698   :  { %1422 = vst [vmem:[%s2861_s6 + $0x30] sm:$0xff] %v1345_v49  ;;  %1072 = vrot.lane.b32.xlu0 %v2706_v53, %s2283_s15 }
0x269c   :  { %1180 = vrot.lane.b32.xlu0 %v2745_v52, %s2283_s15 }
0x26a0   :  { %1288 = vrot.lane.b32.xlu0 %v2784_v56, %s2283_s15 }
0x2706   :  { %v1392_v50 = vpop.permute.xlu0 %1391 }
0x2707   :  { %v1394_v51 = vmul.f32 %v1392_v50, %v1377_v61 }
0x2709   :  { %1396 = vrot.lane.b32.xlu0 %v1394_v51, %s2283_s15 }
0x270a   :  { %v1073_v54 = vpop.permute.xlu0 %1072 }
0x270b   :  { %v1075_v57 = vsel %vm1021_vm8, %v1073_v54, 0.0 }
0x270c   :  { %1417 = vst [vmem:[%s2861_s6 + $0x8] sm:$0xff] %v1075_v57 }
0x270e   :  { %v1181_v58 = vpop.permute.xlu0 %1180 }
0x270f   :  { %v1183_v32 = vsel %vm1021_vm8, %v1181_v58, 0.0 }
0x2710   :  { %1419 = vst [vmem:[%s2861_s6 + $0x18] sm:$0xff] %v1183_v32 }
0x2712   :  { %v1289_v53 = vpop.permute.xlu0 %1288 }
0x2713   :  { %v1291_v52 = vsel %vm1021_vm8, %v1289_v53, 0.0 }
0x2714   :  { %1421 = vst [vmem:[%s2861_s6 + $0x28] sm:$0xff] %v1291_v52 }
0x277b   :  { %v1397_v56 = vpop.permute.xlu0 %1396 }
0x277c   :  { %v1399_v1 = vsel %vm1021_vm8, %v1397_v56, 0.0 }
0x277d   :  { %1423 = vst [vmem:[%s2861_s6 + $0x38] sm:$0xff] %v1399_v1 }
0x277e   :  { %1406 = vsyncpa [#allocation3], 1 }

</bundles_post_ra>
